<compile_context>
chip_gen: v7x
topology: tpu7x:2x2x1
jax: 0.10.0
libtpu: 0.0.40
codegen_flags: <defaults>
</compile_context>

<pallas_src>
import functools
import math

import numpy as np
import jax
import jax.numpy as jnp
from jax.experimental import pallas as pl
from jax.experimental.pallas import tpu as pltpu


def _round_up(x, m):
    return (x + m - 1) // m * m


def _choose_lane_tile(n, max_lane_tile, batch, min_grid_steps=2):
    """Pick the lane tile: a multiple of 128 that exactly divides the
    128-padded spatial extent (no padded stores / no depad copy beyond the
    final <128 lanes), as large as possible under max_lane_tile, and -- when it
    does not force tiny tiles -- leaving >= min_grid_steps grid steps so both
    TensorCores (v7x) / megacore halves get work."""
    n128 = _round_up(n, 128)
    blocks = n128 // 128
    cap = max(1, min(blocks, max_lane_tile // 128))
    divisors = [d for d in range(cap, 0, -1) if blocks % d == 0]
    tile_blocks = divisors[0]                       # largest tile within cap
    min_tile = min(1024, divisors[0] * 128)         # don't shrink below ~1 KiB-lanes
    for d in divisors:
        if batch * (blocks // d) >= min_grid_steps and d * 128 >= min_tile:
            tile_blocks = d
            break
    return tile_blocks * 128, n128


def _image_embedding_sine_kernel(freq_ref, x_ref, out_ref, *,
                                 half, freq_chunk, lane_chunk):
    # freq_ref: (half, 1) f32  -- scale / temperature**(2j/F)
    # x_ref   : (1, 1, T) f32  -- one batch element, one spatial tile (T lanes)
    # out_ref : (1, F, T)      -- F = 2*half on sublanes, T on lanes
    t = x_ref.shape[-1]
    for l0 in range(0, t, lane_chunk):
        lc = min(lane_chunk, t - l0)
        # Broadcast the input row once per lane sub-tile (reused by all freqs).
        xb = jnp.broadcast_to(x_ref[0, :, l0:l0 + lc], (freq_chunk, lc))
        for j0 in range(0, half, freq_chunk):
            cj = min(freq_chunk, half - j0)
            c = freq_ref[j0:j0 + cj, :]                      # (cj, 1)
            arg = xb[:cj] * c                                # (cj, lc)
            # TODO(synk): on v7x (VALU-bound regime) fuse sin/cos into a
            # shared-range-reduction sincos polynomial instead of two calls.
            out_ref[0, j0:j0 + cj, l0:l0 + lc] = (
                jnp.sin(arg).astype(out_ref.dtype))
            out_ref[0, half + j0:half + j0 + cj, l0:l0 + lc] = (
                jnp.cos(arg).astype(out_ref.dtype))


def image_embedding_sine(x, num_pos_feats=64, temperature=10000.0,
                         normalize=True, scale=None, *,
                         max_lane_tile=8192, out_dtype=jnp.float32):
    """Pallas port of ImageEmbeddingSine.forward.  x: (B, 1, H, W)."""
    if scale is not None and normalize is False:
        raise ValueError("normalize should be True if scale is passed")
    if scale is None:
        scale = 2.0 * math.pi
    # NOTE: like the PyTorch forward, `normalize` does not change the math;
    # it only gates whether an explicit `scale` may be passed.

    b, c, h, w = x.shape
    assert c == 1, "ImageEmbeddingSine requires a single input channel"
    assert num_pos_feats % 2 == 0
    half = num_pos_feats // 2

    # Per-frequency multipliers (scale folded in), passed as a small VMEM input
    # (capturing them as constants inside the kernel is rejected by Pallas).
    inv_freq = jnp.asarray(
        [float(scale) * float(temperature) ** (-2.0 * j / num_pos_feats)
         for j in range(half)], dtype=jnp.float32).reshape(half, 1)

    # f32: 8-row chunks (one sublane group); bf16: 16-row chunks so each store
    # is a full packed (16, 128) sublane group.
    out_dt = np.dtype(out_dtype)
    freq_chunk = 16 if out_dt == np.dtype(jnp.bfloat16) else 8
    freq_chunk = min(freq_chunk, half)

    # Spatial tiling: flatten H*W onto lanes, pad only to the 128 boundary,
    # pick a divisor tile (no extra padded writes, no depad copy).
    n = h * w
    tile, n_pad = _choose_lane_tile(n, max_lane_tile, b)
    n_tiles = n_pad // tile
    lane_chunk = min(1024, tile)      # in-kernel sub-tiling bounds vreg pressure

    x_flat = x.reshape(b, 1, n).astype(jnp.float32)
    if n_pad != n:
        x_flat = jnp.pad(x_flat, ((0, 0), (0, 0), (0, n_pad - n)))

    kernel = functools.partial(
        _image_embedding_sine_kernel,
        half=half, freq_chunk=freq_chunk, lane_chunk=lane_chunk)

    out_block_bytes = num_pos_feats * tile * out_dt.itemsize
    in_block_bytes = tile * 4
    # Double-buffered blocks x2 margin, clamped to sane per-chip limits.
    vmem_limit = int(min(64 << 20,
                         max(16 << 20, 4 * (out_block_bytes + in_block_bytes))))

    cost = pl.CostEstimate(
        flops=b * num_pos_feats * n_pad,
        transcendentals=b * num_pos_feats * n_pad,
        bytes_accessed=(b * n_pad * 4
                        + b * num_pos_feats * n_pad * out_dt.itemsize
                        + half * 4),
    )

    out_flat = pl.pallas_call(
        kernel,
        out_shape=jax.ShapeDtypeStruct((b, num_pos_feats, n_pad), out_dtype),
        grid=(b, n_tiles),
        in_specs=[
            pl.BlockSpec((half, 1), lambda i, s: (0, 0)),          # freq table
            pl.BlockSpec((1, 1, tile), lambda i, s: (i, 0, s)),    # x
        ],
        out_specs=pl.BlockSpec((1, num_pos_feats, tile), lambda i, s: (i, 0, s)),
        compiler_params=pltpu.CompilerParams(
            dimension_semantics=("parallel", "parallel"),
            vmem_limit_bytes=vmem_limit),
        cost_estimate=cost,
    )(inv_freq, x_flat)

    if n_pad != n:
        out_flat = out_flat[:, :, :n]
    return out_flat.reshape(b, num_pos_feats, h, w)


def _reference(x, num_pos_feats=64, temperature=10000.0, scale=2.0 * math.pi):
    # Pure-JAX reference mirroring the PyTorch forward.
    x_rep = jnp.tile(x, (1, num_pos_feats, 1, 1)).astype(jnp.float32)
    x_embed = x_rep * scale
    dim_t = jnp.arange(num_pos_feats, dtype=jnp.float32)
    dim_t = temperature ** (2.0 * jnp.floor(dim_t / 2.0) / num_pos_feats)
    pos_x = x_embed / dim_t[None, :, None, None]
    return jnp.concatenate(
        [jnp.sin(pos_x[:, 0::2]), jnp.cos(pos_x[:, 1::2])], axis=1)


if __name__ == "__main__":
    key = jax.random.PRNGKey(0)
    B, C, H, W = 2, 1, 16, 16
    NUM_POS_FEATS = 64

    x = jax.random.uniform(key, (B, C, H, W), dtype=jnp.float32)

    out = image_embedding_sine(x, num_pos_feats=NUM_POS_FEATS)
    out = jax.block_until_ready(out)

    ref = jax.block_until_ready(_reference(x, num_pos_feats=NUM_POS_FEATS))
    assert out.shape == (B, NUM_POS_FEATS, H, W)
    assert jnp.allclose(out, ref, atol=1e-5, rtol=1e-5)

    print("KERNEL_OK")
</pallas_src>

<mosaic_0001>
module attributes {stable_mosaic.version = 11 : i64} {
  func.func @_image_embedding_sine_kernel(%arg0: i32, %arg1: i32, %arg2: memref<32x1xf32, #tpu.memory_space<vmem>>, %arg3: memref<1x1x256xf32, #tpu.memory_space<vmem>>, %arg4: memref<1x64x256xf32, #tpu.memory_space<vmem>>) attributes {dimension_semantics = [#tpu.dimension_semantics<parallel>, #tpu.dimension_semantics<parallel>], iteration_bounds = array<i64: 2, 1>, scalar_prefetch = 0 : i64, scratch_operands = 0 : i64, tpu.core_type = #tpu.core_type<tc>, window_params = [{pipeline_mode = #tpu.pipeline_mode<synchronous>, transform_indices = @transform_0, window_bounds = array<i64: 32, 1>}, {transform_indices = @transform_1, window_bounds = array<i64: 1, 1, 256>}, {transform_indices = @transform_2, window_bounds = array<i64: 1, 64, 256>}]} {
    %c0 = arith.constant 0 : index
    %c0_0 = arith.constant 0 : index
    %c0_1 = arith.constant 0 : index
    %0 = vector.load %arg3[%c0, %c0_0, %c0_1] : memref<1x1x256xf32, #tpu.memory_space<vmem>>, vector<1x1x256xf32>
    %1 = vector.shape_cast %0 : vector<1x1x256xf32> to vector<1x256xf32>
    %2 = vector.shape_cast %1 : vector<1x256xf32> to vector<1x256xf32>
    %3 = vector.broadcast %2 : vector<1x256xf32> to vector<8x256xf32>
    %c0_2 = arith.constant 0 : index
    %c0_3 = arith.constant 0 : index
    %4 = vector.load %arg2[%c0_2, %c0_3] : memref<32x1xf32, #tpu.memory_space<vmem>>, vector<8x1xf32>
    %5 = vector.broadcast %4 : vector<8x1xf32> to vector<8x256xf32>
    %6 = arith.mulf %3, %5 : vector<8x256xf32>
    %7 = math.sin %6 : vector<8x256xf32>
    %c0_4 = arith.constant 0 : index
    %c0_5 = arith.constant 0 : index
    %c0_6 = arith.constant 0 : index
    %8 = vector.load %arg4[%c0_4, %c0_5, %c0_6] : memref<1x64x256xf32, #tpu.memory_space<vmem>>, vector<1x8x256xf32>
    %9 = vector.shape_cast %8 : vector<1x8x256xf32> to vector<8x256xf32>
    %10 = vector.shape_cast %7 : vector<8x256xf32> to vector<1x8x256xf32>
    tpu.vector_store %arg4[%c0_4, %c0_5, %c0_6], %10 {strides = array<i32>} : memref<1x64x256xf32, #tpu.memory_space<vmem>>, vector<1x8x256xf32>,
    %11 = math.cos %6 : vector<8x256xf32>
    %c0_7 = arith.constant 0 : index
    %c32 = arith.constant 32 : index
    %c0_8 = arith.constant 0 : index
    %12 = vector.load %arg4[%c0_7, %c32, %c0_8] : memref<1x64x256xf32, #tpu.memory_space<vmem>>, vector<1x8x256xf32>
    %13 = vector.shape_cast %12 : vector<1x8x256xf32> to vector<8x256xf32>
    %14 = vector.shape_cast %11 : vector<8x256xf32> to vector<1x8x256xf32>
    tpu.vector_store %arg4[%c0_7, %c32, %c0_8], %14 {strides = array<i32>} : memref<1x64x256xf32, #tpu.memory_space<vmem>>, vector<1x8x256xf32>,
    %c8 = arith.constant 8 : index
    %c0_9 = arith.constant 0 : index
    %15 = vector.load %arg2[%c8, %c0_9] : memref<32x1xf32, #tpu.memory_space<vmem>>, vector<8x1xf32>
    %16 = vector.broadcast %15 : vector<8x1xf32> to vector<8x256xf32>
    %17 = arith.mulf %3, %16 : vector<8x256xf32>
    %18 = math.sin %17 : vector<8x256xf32>
    %c0_10 = arith.constant 0 : index
    %c8_11 = arith.constant 8 : index
    %c0_12 = arith.constant 0 : index
    %19 = vector.load %arg4[%c0_10, %c8_11, %c0_12] : memref<1x64x256xf32, #tpu.memory_space<vmem>>, vector<1x8x256xf32>
    %20 = vector.shape_cast %19 : vector<1x8x256xf32> to vector<8x256xf32>
    %21 = vector.shape_cast %18 : vector<8x256xf32> to vector<1x8x256xf32>
    tpu.vector_store %arg4[%c0_10, %c8_11, %c0_12], %21 {strides = array<i32>} : memref<1x64x256xf32, #tpu.memory_space<vmem>>, vector<1x8x256xf32>,
    %22 = math.cos %17 : vector<8x256xf32>
    %c0_13 = arith.constant 0 : index
    %c40 = arith.constant 40 : index
    %c0_14 = arith.constant 0 : index
    %23 = vector.load %arg4[%c0_13, %c40, %c0_14] : memref<1x64x256xf32, #tpu.memory_space<vmem>>, vector<1x8x256xf32>
    %24 = vector.shape_cast %23 : vector<1x8x256xf32> to vector<8x256xf32>
    %25 = vector.shape_cast %22 : vector<8x256xf32> to vector<1x8x256xf32>
    tpu.vector_store %arg4[%c0_13, %c40, %c0_14], %25 {strides = array<i32>} : memref<1x64x256xf32, #tpu.memory_space<vmem>>, vector<1x8x256xf32>,
    %c16 = arith.constant 16 : index
    %c0_15 = arith.constant 0 : index
    %26 = vector.load %arg2[%c16, %c0_15] : memref<32x1xf32, #tpu.memory_space<vmem>>, vector<8x1xf32>
    %27 = vector.broadcast %26 : vector<8x1xf32> to vector<8x256xf32>
    %28 = arith.mulf %3, %27 : vector<8x256xf32>
    %29 = math.sin %28 : vector<8x256xf32>
    %c0_16 = arith.constant 0 : index
    %c16_17 = arith.constant 16 : index
    %c0_18 = arith.constant 0 : index
    %30 = vector.load %arg4[%c0_16, %c16_17, %c0_18] : memref<1x64x256xf32, #tpu.memory_space<vmem>>, vector<1x8x256xf32>
    %31 = vector.shape_cast %30 : vector<1x8x256xf32> to vector<8x256xf32>
    %32 = vector.shape_cast %29 : vector<8x256xf32> to vector<1x8x256xf32>
    tpu.vector_store %arg4[%c0_16, %c16_17, %c0_18], %32 {strides = array<i32>} : memref<1x64x256xf32, #tpu.memory_space<vmem>>, vector<1x8x256xf32>,
    %33 = math.cos %28 : vector<8x256xf32>
    %c0_19 = arith.constant 0 : index
    %c48 = arith.constant 48 : index
    %c0_20 = arith.constant 0 : index
    %34 = vector.load %arg4[%c0_19, %c48, %c0_20] : memref<1x64x256xf32, #tpu.memory_space<vmem>>, vector<1x8x256xf32>
    %35 = vector.shape_cast %34 : vector<1x8x256xf32> to vector<8x256xf32>
    %36 = vector.shape_cast %33 : vector<8x256xf32> to vector<1x8x256xf32>
    tpu.vector_store %arg4[%c0_19, %c48, %c0_20], %36 {strides = array<i32>} : memref<1x64x256xf32, #tpu.memory_space<vmem>>, vector<1x8x256xf32>,
    %c24 = arith.constant 24 : index
    %c0_21 = arith.constant 0 : index
    %37 = vector.load %arg2[%c24, %c0_21] : memref<32x1xf32, #tpu.memory_space<vmem>>, vector<8x1xf32>
    %38 = vector.broadcast %37 : vector<8x1xf32> to vector<8x256xf32>
    %39 = arith.mulf %3, %38 : vector<8x256xf32>
    %40 = math.sin %39 : vector<8x256xf32>
    %c0_22 = arith.constant 0 : index
    %c24_23 = arith.constant 24 : index
    %c0_24 = arith.constant 0 : index
    %41 = vector.load %arg4[%c0_22, %c24_23, %c0_24] : memref<1x64x256xf32, #tpu.memory_space<vmem>>, vector<1x8x256xf32>
    %42 = vector.shape_cast %41 : vector<1x8x256xf32> to vector<8x256xf32>
    %43 = vector.shape_cast %40 : vector<8x256xf32> to vector<1x8x256xf32>
    tpu.vector_store %arg4[%c0_22, %c24_23, %c0_24], %43 {strides = array<i32>} : memref<1x64x256xf32, #tpu.memory_space<vmem>>, vector<1x8x256xf32>,
    %44 = math.cos %39 : vector<8x256xf32>
    %c0_25 = arith.constant 0 : index
    %c56 = arith.constant 56 : index
    %c0_26 = arith.constant 0 : index
    %45 = vector.load %arg4[%c0_25, %c56, %c0_26] : memref<1x64x256xf32, #tpu.memory_space<vmem>>, vector<1x8x256xf32>
    %46 = vector.shape_cast %45 : vector<1x8x256xf32> to vector<8x256xf32>
    %47 = vector.shape_cast %44 : vector<8x256xf32> to vector<1x8x256xf32>
    tpu.vector_store %arg4[%c0_25, %c56, %c0_26], %47 {strides = array<i32>} : memref<1x64x256xf32, #tpu.memory_space<vmem>>, vector<1x8x256xf32>,
    return
  }
  func.func @transform_0(%arg0: i32, %arg1: i32) -> (i32, i32) {
    %c0_i32 = arith.constant 0 : i32
    %c0_i32_0 = arith.constant 0 : i32
    %c0_i32_1 = arith.constant 0 : i32
    return %c0_i32, %c0_i32_0 : i32, i32
  }
  func.func @transform_1(%arg0: i32, %arg1: i32) -> (i32, i32, i32) {
    %c0_i32 = arith.constant 0 : i32
    %c0_i32_0 = arith.constant 0 : i32
    return %arg0, %c0_i32, %arg1 : i32, i32, i32
  }
  func.func @transform_2(%arg0: i32, %arg1: i32) -> (i32, i32, i32) {
    %c0_i32 = arith.constant 0 : i32
    %c0_i32_0 = arith.constant 0 : i32
    return %arg0, %c0_i32, %arg1 : i32, i32, i32
  }
}

</mosaic_0001>

<bundles_post_ra>
// kernel: tpu_custom_call.1
= control target key start
LH: loop header
LB: loop body
LE: loop exit
PB: predicated region body
PF: predicated region fallthrough
CT: control target
= control target key end

     0   :  { %7 = vsyncpa [#allocation3], 0  ;;  %s3180_s0 = inlined_call_operand.vmem [shape: f32[32,1], index: 0, kind: input, shape index: {}]   ;;  %s3181_s1 = inlined_call_operand.vmem [shape: f32[2,1,256], index: 1, kind: input, shape index: {}]   ;;  %s3182_s2 = inlined_call_operand.hbm [shape: f32[2,64,256], index: 2, kind: output, shape index: {}]  }
   0x1   :  { %9 = vsyncpa [#allocation3 + $0x1], 0  ;;  %s2290_s9 = smov 0   ;;  %s2292_s10 = smov 0  }
   0x2   :  { %s2294_s11 = smov 0   ;;  %s2296_s12 = smov 0  }
   0x3   :  { %s2298_s13 = smov 0   ;;  %s2300_s14 = smov 0  }
   0x4 LB: > { %s1978_s15 = sadd.s32 4294967295, %s2263_s14   ;;  %s1979_s16 = sadd.s32 4294967294, %s2263_s14   ;;  %s2263_s14 = sphi %s2300_s14, %s15_s14   ;;  %s2259_s13 = sphi %s2298_s13, %s3203_s13   ;;  %s2255_s12 = sphi %s2296_s12, %s3202_s12   ;;  %s2251_s11 = sphi %s2294_s11, %s3201_s11   ;;  %s2247_s10 = sphi %s2292_s10, %s3200_s10   ;;  %s2243_s9 = sphi %s2290_s9, %s3199_s9  }
   0x5   : > { %s27_s17 = sadd.s32 1, %s2259_s13  ;;  %s85_s18 = sadd.s32 1, %s2251_s11 }
   0x6   : > { %p29_p0 = scmp.ge.s32.totalorder %s27_s17, 2  ;;  %p95_p1 = scmp.ne.s32.totalorder %s2251_s11, %s2247_s10 }
   0x7   : > { %p96_p2 = scmp.eq.s32.totalorder %s1978_s15, 1  ;;  %p101_p3 = scmp.ne.s32.totalorder %s2247_s10, %s2243_s9 }
   0x8   : > { %s3205_s17 = smov (%p29_p0, %s27_s17), 0  ;;  %p102_p5 = scmp.eq.s32.totalorder %s1979_s16, 1 }
   0x9   : > { %p2330_p4 = por %p96_p2, %p95_p1  ;;  %s80_s20 = ssub.s32 %s2259_s13, %s3205_s17 }
   0xa   : > { %p1982_p6 = scmp.ge.s32.totalorder %s2263_s14, 1  ;;  %p83_p7 = scmp.eq.s32.totalorder %s80_s20, 0 }
   0xb   : > { %p2337_p8 = por %p102_p5, %p101_p3  ;;  %p135_p9 = scmp.lt.s32.totalorder %s2263_s14, 3 }
   0xc   : > { %s2343_s22 = scalar_select %p83_p7, %s2251_s11, %s85_s18  }
   0xd   : > { %p136_p10 = pnand %p1982_p6, %p135_p9 }
   0xe   : > { %v1034_v0 = vld [vmem:[%s3180_s0 + $0x10] sm:$0xff] (!%p136_p10)  ;;  %v182_v1 = vld [vmem:[%s3180_s0] sm:$0xff] (!%p136_p10)  ;;  %v2265_v2 = vmov (!%p136_p10), 0   ;;  %v1460_v3 = vld [vmem:[%s3180_s0 + $0x18] sm:$0xff] (!%p136_p10)  ;;  %p161_p11 = scmp.lt.s32.totalorder (!%p136_p10), %s2255_s12, 1  ;;  %v172_v5 = vlaneseq (!%p136_p10)  ;;  %s157_s8 = sand.u32 (!%p136_p10), 1, %s2247_s10  }
   0xf   : > { %139 = sbr.rel (%p136_p10) target bundleno = 404 (0x194), region = 28  ;;  %2152 = vset.pattern.permute.xlu1 (!%p136_p10), %v2265_v2  ;;  %2151 = vset.pattern.permute.xlu0 (!%p136_p10), %v2265_v2  ;;  %v608_v4 = vld [vmem:[%s3180_s0 + $0x8] sm:$0xff] (!%p136_p10)  ;;  %v2266_v43 = vmov (!%p136_p10), 683565275   ;;  %v2267_v47 = vmov (!%p136_p10), 2475754826  }
  0x10   : > { %1037 = vperm.xlu1 (!%p136_p10), %2152, %v1034_v0   ;;  %185 = vperm.xlu0 (!%p136_p10), %2151, %v182_v1   ;;  %v173_v6 = vshrl.u32 (!%p136_p10), %v172_v5, 7  ;;  %v2268_v49 = vmov (!%p136_p10), 2131351028   ;;  %v2269_v51 = vmov (!%p136_p10), 2102212464   ;;  %s1983_s15 = sshll.u32 (!%p136_p10), %s157_s8, 7 }
  0x11   : > { %v2270_v53 = vmov (!%p136_p10), 920167782   ;;  %v2271_v60 = vmov (!%p136_p10), 1326507024   ;;  %s2671_s16 = scalar_lea.vmem (!%p136_p10), [#allocation2], %s1983_s15  ;;  %s2054_s18 = sshll.u32 (!%p136_p10), %s2255_s12, 11 }
  0x12   : > { %v174_v7 = vsub.s32 (!%p136_p10), 0, %v173_v6  ;;  %v178_v8 = vsub.s32 (!%p136_p10), 1, %v173_v6  ;;  %s1902_s20 = sshll.u32 (!%p136_p10), %s2671_s16, 4  ;;  %s3134_s25 = scalar_lea.sflag (!%p136_p10), [#allocation3], %s157_s8  ;;  %s3127_s20 = int_to_ptr.vmem [resolvable:$true] %s1902_s20 }
  0x13   : > { %s2185_s26 = scalar_lea.vmem (!%p136_p10), %s3127_s20, 2048  ;;  %s2272_s27 = smov (!%p136_p10), [#allocation2]  }
  0x14   : > { %1463 = vperm.xlu1 (!%p136_p10), %2152, %v1460_v3   ;;  %611 = vperm.xlu0 (!%p136_p10), %2151, %v608_v4   ;;  %p2186_p12 = scmp.ne.s32.totalorder (!%p136_p10), %s3127_s20, %s2185_s26  ;;  %s2189_s28 = sshll.u32 (!%p136_p10), %s2272_s27, 4  ;;  %s2190_s28 = int_to_ptr.vmem [resolvable:$false] %s2189_s28 }
  0x15   : > { %s2191_s29 = scalar_lea.vmem (!%p136_p10), %s2190_s28, 4096  ;;  %p2192_p1 = scmp.lt.s32.totalorder (!%p136_p10), %s3127_s20, %s2190_s28 }
  0x16   : > { %s162_s3 = scalar_select %p161_p11, %s2255_s12, 1 }
  0x17   : > { %s3125_s12 = scalar_lea.hbm %s3182_s2, %s2054_s18  ;;  %p2187_p13 = pnand %p2186_p12, %p2330_p4 }
  0x18   : > { %s1984_s4 = sshll.u32 %s162_s3, 1  ;;  %p2193_p2 = scmp.lt.s32.totalorder %s2191_s29, %s2185_s26 }
  0x19   : > { %s167_s7 = scalar_lea.vmem %s3181_s1, %s1984_s4  ;;  %p2188_p0 = pneg %p2187_p13 }
  0x1a   : > { %v170_v9 = vld [vmem:[%s167_s7] sm:$0x3]  ;;  %p2194_p3 = por %p2193_p2, %p2192_p1 }
  0x1b   : > { %v2362_v10 = vrot.slane %v170_v9, %v174_v7  ;;  %v2364_v11 = vrot.slane %v170_v9, %v178_v8 }
  0x1c   : > { %p2195_p5 = pnand %p2194_p3, %p2188_p0 }
  0x8f   : > { %v186_v12 = vpop.permute.xlu0 %185 }
  0x90   : > { %v2367_v13 = vmul.f32 %v186_v12, %v2362_v10  ;;  %v2370_v14 = vmul.f32 %v186_v12, %v2364_v11 }
  0x92   : > { %v190_v15 = vand.u32 2147483647, %v2367_v13  ;;  %v193_v16 = vand.u32 2139095040, %v2367_v13  ;;  %v294_v18 = vand.u32 2147483647, %v2370_v14  ;;  %v297_v19 = vand.u32 2139095040, %v2370_v14 }
  0x93   : > { %v2374_v17 = vpop.permute.xlu0 %611  ;;  %vm192_vm14 = vcmp.lt.s32.totalorder %v2367_v13, 0 }
  0x94   : > { %v194_v20 = vshrl.u32 %v193_v16, 23  ;;  %v2380_v21 = vmul.f32 %v2374_v17, %v2362_v10  ;;  %v197_v22 = vand.u32 8388607, %v190_v15  ;;  %v298_v23 = vshrl.u32 %v297_v19, 23 }
  0x95   : > { %v301_v24 = vand.u32 8388607, %v294_v18  ;;  %vm2477_vm13 = vcmp.le.f32.partialorder %v190_v15, 0.7853982 }
  0x96   : > { %v1985_v25 = vadd.s32 4294967169, %v194_v20  ;;  %v1989_v26 = vadd.s32 4294967169, %v298_v23  ;;  %v619_v27 = vand.u32 2139095040, %v2380_v21  ;;  %v198_v29 = vor.u32 8388608, %v197_v22 }
  0x97   : > { %v302_v30 = vor.u32 8388608, %v301_v24  ;;  %v616_v41 = vand.u32 2147483647, %v2380_v21 }
  0x98   : > { %v200_v28 = vadd.s32 1, %v1985_v25  ;;  %v304_v31 = vadd.s32 1, %v1989_v26  ;;  %v620_v32 = vshrl.u32 %v619_v27, 23  ;;  %v2387_v38 = vshll.u32 %v198_v29, 8 }
  0x99   : > { %v2391_v40 = vshll.u32 %v302_v30, 8 }
  0x9a   : > { %vm201_vm0 = vcmp.gt.s32.totalorder %v200_v28, 0  ;;  %vm305_vm1 = vcmp.gt.s32.totalorder %v304_v31, 0  ;;  %v2001_v34 = vadd.s32 4294967169, %v620_v32 }
  0x9b   : > { %v202_v33 = vsel %vm201_vm0, %v200_v28, 0  ;;  %v306_v37 = vsel %vm305_vm1, %v304_v31, 0  ;;  %vm296_vm0 = vcmp.lt.s32.totalorder %v2370_v14, 0 }
  0x9c   : > { %v203_v35 = vshrl.u32 %v202_v33, 5  ;;  %v204_v36 = vand.u32 31, %v202_v33  ;;  %v2389_v39 = vshrl.u32 %v306_v37, 5  ;;  %v308_v45 = vand.u32 31, %v306_v37 }
  0x9d   : > { %v2395_v46 = vadd.s32 1, %v2001_v34 }
  0x9e   : > { %v205_v42 = vsub.s32 32, %v204_v36  ;;  %v207_v44 = vshll.u32 %v2266_v43, %v204_v36  ;;  %v210_v48 = vshll.u32 %v2267_v47, %v204_v36  ;;  %v213_v50 = vshll.u32 %v2268_v49, %v204_v36 }
  0x9f   : > { %v216_v52 = vshll.u32 %v2269_v51, %v204_v36  ;;  %v219_v54 = vshll.u32 %v2270_v53, %v204_v36  ;;  %vm222_vm2 = vcmp.lt.s32.totalorder %v203_v35, 1  ;;  %vm223_vm3 = vcmp.lt.s32.totalorder %v203_v35, 2 }
  0xa0   : > { %v208_v55 = vshrl.u32 %v2267_v47, %v205_v42  ;;  %v211_v56 = vshrl.u32 %v2268_v49, %v205_v42  ;;  %v214_v57 = vshrl.u32 %v2269_v51, %v205_v42  ;;  %v206_v58 = vshrl.u32 %v2266_v43, %v205_v42 }
  0xa1   : > { %v217_v59 = vshrl.u32 %v2270_v53, %v205_v42  ;;  %v220_v61 = vshrl.u32 %v2271_v60, %v205_v42  ;;  %v309_v1 = vsub.s32 32, %v308_v45  ;;  %vm224_vm4 = vcmp.lt.s32.totalorder %v203_v35, 3 }
  0xa2   : > { %v209_v62 = vor.u32 %v208_v55, %v207_v44  ;;  %v212_v63 = vor.u32 %v211_v56, %v210_v48  ;;  %v215_v0 = vor.u32 %v214_v57, %v213_v50  ;;  %vm225_vm5 = vcmp.lt.s32.totalorder %v203_v35, 4 }
  0xa3   : > { %v218_v2 = vor.u32 %v217_v59, %v216_v52  ;;  %v221_v3 = vor.u32 %v220_v61, %v219_v54  ;;  %v311_v16 = vshll.u32 %v2266_v43, %v308_v45  ;;  %v312_v22 = vshrl.u32 %v2267_v47, %v309_v1 }
  0xa4   : > { %v226_v4 = vsel %vm222_vm2, %v206_v58, %v209_v62  ;;  %v227_v5 = vsel %vm225_vm5, %v215_v0, 2102212464  ;;  %v230_v6 = vsel %vm222_vm2, %v209_v62, %v212_v63  ;;  %v234_v7 = vsel %vm222_vm2, %v212_v63, %v215_v0 }
  0xa5   : > { %v228_v8 = vsel %vm224_vm4, %v212_v63, %v227_v5  ;;  %v231_v9 = vsel %vm225_vm5, %v218_v2, 920167782  ;;  %v235_v12 = vsel %vm225_vm5, %v221_v3, 1326507024  ;;  %v314_v23 = vshll.u32 %v2267_v47, %v308_v45 }
  0xa6   : > { %v232_v19 = vsel %vm224_vm4, %v215_v0, %v231_v9  ;;  %v236_v20 = vsel %vm224_vm4, %v218_v2, %v235_v12  ;;  %v229_v24 = vsel %vm223_vm3, %v226_v4, %v228_v8  ;;  %v315_v27 = vshrl.u32 %v2268_v49, %v309_v1 }
  0xa7   : > { %v233_v25 = vsel %vm223_vm3, %v230_v6, %v232_v19  ;;  %v237_v26 = vsel %vm223_vm3, %v234_v7, %v236_v20  ;;  %v313_v32 = vor.u32 %v312_v22, %v311_v16  ;;  %v317_v34 = vshll.u32 %v2268_v49, %v308_v45 }
  0xa8   : > { %v2418_v28 = vmul.u32.u64.low %v2387_v38, %v237_v26  ;;  %v2419_v29 = vmul.u32.u64.high %v2387_v38, %v237_v26, %v2418_v28  ;;  %v2422_v30 = vmul.u32.u64.low %v2387_v38, %v233_v25  ;;  %v2423_v31 = vmul.u32.u64.high %v2387_v38, %v233_v25, %v2422_v30 }
  0xa9   : > { %v316_v33 = vor.u32 %v315_v27, %v314_v23  ;;  %v318_v36 = vshrl.u32 %v2269_v51, %v309_v1  ;;  %v310_v35 = vshrl.u32 %v2266_v43, %v309_v1  ;;  %v320_v37 = vshll.u32 %v2269_v51, %v308_v45 }
  0xaa   : > { %v321_v42 = vshrl.u32 %v2270_v53, %v309_v1  ;;  %v324_v44 = vshrl.u32 %v2271_v60, %v309_v1  ;;  %v245_v48 = vmul.u32 %v2387_v38, %v229_v24  ;;  %v323_v52 = vshll.u32 %v2270_v53, %v308_v45 }
  0xab   : > { %v319_v50 = vor.u32 %v318_v36, %v317_v34  ;;  %vm326_vm6 = vcmp.lt.s32.totalorder %v2389_v39, 1  ;;  %vm247_vm7 = vc.u32 %v2419_v29, %v2422_v30  ;;  %v248_v54 = vadd.s32 1, %v2423_v31 }
  0xac   : > { %v322_v55 = vor.u32 %v321_v42, %v320_v37  ;;  %vm327_vm8 = vcmp.lt.s32.totalorder %v2389_v39, 2  ;;  %v325_v56 = vor.u32 %v324_v44, %v323_v52  ;;  %vm328_vm9 = vcmp.lt.s32.totalorder %v2389_v39, 3 }
  0xad   : > { %vm329_vm10 = vcmp.lt.s32.totalorder %v2389_v39, 4  ;;  %v334_v57 = vsel %vm326_vm6, %v313_v32, %v316_v33  ;;  %v249_v38 = vsel %vm247_vm7, %v248_v54, %v2423_v31  ;;  %v338_v59 = vsel %vm326_vm6, %v316_v33, %v319_v50  ;;  %v1038_v39 = vpop.permute.xlu1 %1037 }
  0xae   : > { %v331_v58 = vsel %vm329_vm10, %v319_v50, 2102212464  ;;  %v335_v45 = vsel %vm329_vm10, %v322_v55, 920167782  ;;  %v250_v61 = vadd.s32 %v249_v38, %v245_v48  ;;  %v330_v62 = vsel %vm326_vm6, %v310_v35, %v313_v32 }
  0xaf   : > { %v336_v63 = vsel %vm328_vm9, %v319_v50, %v335_v45  ;;  %v339_v0 = vsel %vm329_vm10, %v325_v56, 1326507024  ;;  %v332_v1 = vsel %vm328_vm9, %v316_v33, %v331_v58  ;;  %vm627_vm11 = vcmp.gt.s32.totalorder %v2395_v46, 0 }
  0xb0   : > { %v337_v2 = vsel %vm327_vm8, %v334_v57, %v336_v63  ;;  %v340_v3 = vsel %vm328_vm9, %v322_v55, %v339_v0  ;;  %v251_v4 = vadd.s32 536870912, %v250_v61  ;;  %v2457_v12 = vmul.f32 %v2374_v17, %v2364_v11 }
  0xb1   : > { %v341_v5 = vsel %vm327_vm8, %v338_v59, %v340_v3  ;;  %v2448_v6 = vmul.u32.u64.low %v2391_v40, %v337_v2  ;;  %v2449_v7 = vmul.u32.u64.high %v2391_v40, %v337_v2, %v2448_v6  ;;  %v333_v19 = vsel %vm327_vm8, %v330_v62, %v332_v1 }
  0xb2   : > { %v2452_v8 = vmul.u32.u64.low %v2391_v40, %v341_v5  ;;  %v2453_v9 = vmul.u32.u64.high %v2391_v40, %v341_v5, %v2452_v8  ;;  %v252_v16 = vshrl.u32 %v251_v4, 30  ;;  %v628_v20 = vsel %vm627_vm11, %v2395_v46, 0 }
  0xb3   : > { %v352_v23 = vadd.s32 1, %v2449_v7  ;;  %v623_v24 = vand.u32 8388607, %v616_v41  ;;  %v349_v25 = vmul.u32 %v2391_v40, %v333_v19  ;;  %v723_v26 = vand.u32 2139095040, %v2457_v12 }
  0xb4   : > { %v253_v22 = vshll.u32 %v252_v16, 30  ;;  %vm351_vm12 = vc.u32 %v2453_v9, %v2448_v6  ;;  %v630_v28 = vand.u32 31, %v628_v20  ;;  %v276_v33 = vsub.s32 4, %v252_v16 }
  0xb5   : > { %v353_v27 = vsel %vm351_vm12, %v352_v23, %v2449_v7  ;;  %v624_v46 = vor.u32 8388608, %v623_v24  ;;  %v724_v36 = vshrl.u32 %v723_v26, 23  ;;  %v2470_v42 = vmul.f32 %v1038_v39, %v2362_v10 }
  0xb6   : > { %v254_v17 = vsub.s32 %v250_v61, %v253_v22  ;;  %v354_v31 = vadd.s32 %v353_v27, %v349_v25  ;;  %v631_v37 = vsub.s32 32, %v630_v28  ;;  %v2473_v40 = vmul.f32 %v1038_v39, %v2364_v11 }
  0xb7   : > { %v720_v50 = vand.u32 2147483647, %v2457_v12  ;;  %v246_v52 = vadd.s32 %v2422_v30, %v2419_v29  ;;  %v2487_v55 = vshrl.u32 %v628_v20, 5  ;;  %v2489_v56 = vshll.u32 %v624_v46, 8 }
  0xb8   : > { %v256_v32 = vsub.s32 0, %v254_v17  ;;  %v355_v34 = vadd.s32 536870912, %v354_v31  ;;  %v277_v15 = vsel %vm192_vm14, %v276_v33, %v252_v16  ;;  %v2494_v57 = vadd.s32 %v2448_v6, %v2453_v9 }
  0xb9   : > { %v2005_v58 = vadd.s32 4294967169, %v724_v36  ;;  %v633_v59 = vshll.u32 %v2266_v43, %v630_v28  ;;  %v634_v61 = vshrl.u32 %v2267_v47, %v631_v37  ;;  %v636_v29 = vshll.u32 %v2267_v47, %v630_v28 }
  0xba   : > { %v1986_v35 = vmin.u32 %v256_v32, %v254_v17  ;;  %v2482_v48 = vshrl.u32 %v355_v34, 30  ;;  %v637_v62 = vshrl.u32 %v2268_v49, %v631_v37  ;;  %v640_v63 = vshrl.u32 %v2269_v51, %v631_v37 }
  0xbb   : > { %v643_v0 = vshrl.u32 %v2270_v53, %v631_v37  ;;  %v2507_v1 = vsel %vm2477_vm13, 0, %v277_v15  ;;  %v632_v2 = vshrl.u32 %v2266_v43, %v631_v37  ;;  %v646_v3 = vshrl.u32 %v2271_v60, %v631_v37 }
  0xbc   : > { %v258_v54 = vclz %v1986_v35  ;;  %v357_v38 = vshll.u32 %v2482_v48, 30  ;;  %v639_v6 = vshll.u32 %v2268_v49, %v630_v28  ;;  %v642_v7 = vshll.u32 %v2269_v51, %v630_v28 }
  0xbd   : > { %v635_v16 = vor.u32 %v634_v61, %v633_v59  ;;  %v645_v19 = vshll.u32 %v2270_v53, %v630_v28  ;;  %v638_v22 = vor.u32 %v637_v62, %v636_v29  ;;  %v380_v32 = vsub.s32 4, %v2482_v48 }
  0xbe   : > { %v1987_v45 = vadd.s32 4294967294, %v258_v54  ;;  %v2500_v30 = vsub.s32 %v354_v31, %v357_v38  ;;  %v641_v23 = vor.u32 %v640_v63, %v639_v6  ;;  %v644_v24 = vor.u32 %v643_v0, %v642_v7 }
  0xbf   : > { %v647_v39 = vor.u32 %v646_v3, %v645_v19  ;;  %vm648_vm1 = vcmp.lt.s32.totalorder %v2487_v55, 1  ;;  %vm649_vm2 = vcmp.lt.s32.totalorder %v2487_v55, 2  ;;  %vm650_vm3 = vcmp.lt.s32.totalorder %v2487_v55, 3 }
  0xc0   : > { %vm1988_vm15 = vcmp.lt.s32.totalorder %v1987_v45, 0  ;;  %v360_v5 = vsub.s32 0, %v2500_v30  ;;  %vm651_vm4 = vcmp.lt.s32.totalorder %v2487_v55, 4  ;;  %v660_v36 = vsel %vm648_vm1, %v638_v22, %v641_v23 }
  0xc1   : > { %v261_v4 = vsel %vm1988_vm15, 0, %v1987_v45  ;;  %v657_v34 = vsel %vm651_vm4, %v644_v24, 920167782  ;;  %vm2528_vm5 = vcmp.le.f32.partialorder %v294_v18, 0.7853982  ;;  %v652_v45 = vsel %vm648_vm1, %v632_v2, %v635_v16 }
  0xc2   : > { %v262_v8 = vsub.s32 32, %v261_v4  ;;  %v266_v9 = vsub.s32 4294967266, %v261_v4  ;;  %v1990_v20 = vmin.u32 %v360_v5, %v2500_v30  ;;  %v263_v25 = vshll.u32 %v254_v17, %v261_v4 }
  0xc3   : > { %v656_v17 = vsel %vm648_vm1, %v635_v16, %v638_v22  ;;  %v658_v54 = vsel %vm650_vm3, %v641_v23, %v657_v34  ;;  %v661_v15 = vsel %vm651_vm4, %v647_v39, 1326507024  ;;  %v730_v4 = vadd.s32 1, %v2005_v58 }
  0xc4   : > { %v264_v26 = vshrl.u32 %v246_v52, %v262_v8  ;;  %v267_v27 = vadd.s32 127, %v266_v9  ;;  %v362_v31 = vclz %v1990_v20  ;;  %v653_v52 = vsel %vm651_vm4, %v641_v23, 2102212464 }
  0xc5   : > { %v662_v59 = vsel %vm650_vm3, %v644_v24, %v661_v15  ;;  %v659_v18 = vsel %vm649_vm2, %v656_v17, %v658_v54  ;;  %v654_v3 = vsel %vm650_vm3, %v638_v22, %v653_v52  ;;  %v283_v23 = vadd.s32 3, %v2507_v1 }
  0xc6   : > { %v265_v46 = vor.u32 %v264_v26, %v263_v25  ;;  %v268_v28 = vshll.u32 %v267_v27, 23  ;;  %v1991_v33 = vadd.s32 4294967294, %v362_v31  ;;  %v663_v62 = vsel %vm649_vm2, %v660_v36, %v662_v59 }
  0xc7   : > { %v2546_v6 = vmul.u32.u64.low %v2489_v56, %v663_v62  ;;  %v2547_v7 = vmul.u32.u64.high %v2489_v56, %v663_v62, %v2546_v6  ;;  %v2551_v16 = vmul.u32.u64.low %v2489_v56, %v659_v18  ;;  %v2552_v19 = vmul.u32.u64.high %v2489_v56, %v659_v18, %v2551_v16 }
  0xc8   : > { %v269_v35 = vor.u32 4788187, %v268_v28  ;;  %v272_v38 = vcvt.s32.f32 %v265_v46  ;;  %vm1992_vm6 = vcmp.lt.s32.totalorder %v1991_v33, 0  ;;  %v381_v58 = vsel %vm296_vm0, %v380_v32, %v2482_v48 }
  0xc9   : > { %v365_v29 = vsel %vm1992_vm6, 0, %v1991_v33  ;;  %vm731_vm7 = vcmp.gt.s32.totalorder %v730_v4, 0  ;;  %v655_v24 = vsel %vm649_vm2, %v652_v45, %v654_v3  ;;  %v2564_v26 = vand.u32 3, %v2507_v1 }
  0xca   : > { %v270_v61 = vand.u32 2147483647, %v269_v35  ;;  %v366_v63 = vsub.s32 32, %v365_v29  ;;  %v370_v0 = vsub.s32 4294967266, %v365_v29  ;;  %v367_v2 = vshll.u32 %v2500_v30, %v365_v29 }
  0xcb   : > { %vm673_vm8 = vc.u32 %v2547_v7, %v2551_v16  ;;  %v727_v27 = vand.u32 8388607, %v720_v50  ;;  %v383_v55 = vsel %vm2528_vm5, 0, %v381_v58  ;;  %v674_v31 = vadd.s32 1, %v2552_v19 }
  0xcc   : > { %v273_v5 = vmul.f32 %v272_v38, %v270_v61  ;;  %v368_v8 = vshrl.u32 %v2494_v57, %v366_v63  ;;  %v371_v9 = vadd.s32 127, %v370_v0  ;;  %v732_v57 = vsel %vm731_vm7, %v730_v4, 0 }
  0xcd   : > { %v2576_v32 = vand.u32 3, %v283_v23  ;;  %v671_v1 = vmul.u32 %v2489_v56, %v655_v24  ;;  %v734_v46 = vand.u32 31, %v732_v57  ;;  %v675_v17 = vsel %vm673_vm8, %v674_v31, %v2552_v19 }
  0xce   : > { %v274_v20 = vxor.u32 2147483648, %v273_v5  ;;  %v369_v30 = vor.u32 %v368_v8, %v367_v2  ;;  %v372_v22 = vshll.u32 %v371_v9, 23  ;;  %v387_v34 = vadd.s32 3, %v383_v55 }
  0xcf   : > { %v2580_v44 = vand.u32 3, %v383_v55  ;;  %v676_v36 = vadd.s32 %v675_v17, %v671_v1  ;;  %v2582_v35 = vsub.s32 32, %v734_v46  ;;  %v728_v54 = vor.u32 8388608, %v727_v27 }
  0xd0   : > { %v275_v25 = vsel %vm192_vm14, %v274_v20, %v273_v5  ;;  %v373_v39 = vor.u32 4788187, %v372_v22  ;;  %v376_v33 = vcvt.s32.f32 %v369_v30  ;;  %v2584_v15 = vshrl.u32 %v732_v57, 5 }
  0xd1   : > { %v278_v48 = vsel %vm2477_vm13, %v2367_v13, %v275_v25  ;;  %v737_v38 = vshll.u32 %v2266_v43, %v734_v46  ;;  %vm289_vm9 = vcmp.eq.s32.totalorder %v2576_v32, 2  ;;  %vm498_vm10 = vcmp.eq.s32.totalorder %v2564_v26, 2 }
  0xd2   : > { %2153 = vcosq.f32 %v278_v48  ;;  %v374_v28 = vand.u32 2147483647, %v373_v39  ;;  %v677_v56 = vadd.s32 536870912, %v676_v36  ;;  %v738_v45 = vshrl.u32 %v2267_v47, %v2582_v35 }
  0xd3   : > { %2155 = vsinq.f32 %v278_v48  ;;  %v741_v59 = vshrl.u32 %v2268_v49, %v2582_v35  ;;  %v746_v61 = vshll.u32 %v2269_v51, %v734_v46  ;;  %vm286_vm11 = vcmp.eq.s32.totalorder %v2576_v32, 0 }
  0xd4   : > { %v377_v52 = vmul.f32 %v376_v33, %v374_v28  ;;  %vm495_vm12 = vcmp.eq.s32.totalorder %v2564_v26, 0  ;;  %v744_v18 = vshrl.u32 %v2269_v51, %v2582_v35  ;;  %v747_v62 = vshrl.u32 %v2270_v53, %v2582_v35 }
  0xd5   : > { %v750_v63 = vshrl.u32 %v2271_v60, %v2582_v35  ;;  %vm285_vm13 = vcmp.lt.s32.totalorder %v2576_v32, 2  ;;  %v2603_v0 = vand.u32 3, %v387_v34  ;;  %vm494_vm14 = vcmp.lt.s32.totalorder %v2564_v26, 2 }
  0xd6   : > { %v378_v29 = vxor.u32 2147483648, %v377_v52  ;;  %v2606_v3 = vshrl.u32 %v677_v56, 30  ;;  %v740_v4 = vshll.u32 %v2267_v47, %v734_v46  ;;  %v743_v5 = vshll.u32 %v2268_v49, %v734_v46 }
  0xd7   : > { %vm282_vm15 = vweird.f32 %v2367_v13  ;;  %v739_v6 = vor.u32 %v738_v45, %v737_v38  ;;  %v748_v8 = vor.u32 %v747_v62, %v746_v61  ;;  %v749_v9 = vshll.u32 %v2270_v53, %v734_v46 }
  0xd8   : > { %v379_v2 = vsel %vm296_vm0, %v378_v29, %v377_v52  ;;  %v679_v20 = vshll.u32 %v2606_v3, 30  ;;  %v742_v23 = vor.u32 %v741_v59, %v740_v4  ;;  %v745_v58 = vor.u32 %v744_v18, %v743_v5 }
  0xd9   : > { %v382_v19 = vsel %vm2528_vm5, %v2370_v14, %v379_v2  ;;  %v751_v30 = vor.u32 %v750_v63, %v749_v9  ;;  %vm755_vm1 = vcmp.lt.s32.totalorder %v2584_v15, 4  ;;  %v2620_v22 = vshll.u32 %v728_v54, 8 }
  0xda   : > { %2157 = vcosq.f32 %v382_v19  ;;  %v2622_v57 = vsub.s32 %v676_v36, %v679_v20  ;;  %v761_v25 = vsel %vm755_vm1, %v748_v8, 920167782  ;;  %v1045_v37 = vand.u32 2139095040, %v2470_v42 }
  0xdb   : > { %2159 = vsinq.f32 %v382_v19  ;;  %vm752_vm0 = vcmp.lt.s32.totalorder %v2584_v15, 1  ;;  %vm753_vm2 = vcmp.lt.s32.totalorder %v2584_v15, 2  ;;  %vm754_vm3 = vcmp.lt.s32.totalorder %v2584_v15, 3 }
  0xdc   : > { %v2154_v24 = vpop.eup %2153  ;;  %vm618_vm4 = vcmp.lt.s32.totalorder %v2380_v21, 0  ;;  %v682_v55 = vsub.s32 0, %v2622_v57  ;;  %v757_v31 = vsel %vm755_vm1, %v745_v58, 2102212464  ;;  %v760_v1 = vsel %vm752_vm0, %v739_v6, %v742_v23 }
  0xdd   : > { %v2156_v27 = vpop.eup %2155  ;;  %v290_v48 = vxor.u32 2147483648, %v2154_v24  ;;  %vm601_vm5 = vcmp.eq.s32.totalorder %v2580_v44, 2  ;;  %v762_v33 = vsel %vm754_vm3, %v745_v58, %v761_v25  ;;  %v765_v17 = vsel %vm755_vm1, %v751_v30, 1326507024 }
  0xde   : > { %v287_v39 = vxor.u32 2147483648, %v2156_v27  ;;  %vm598_vm6 = vcmp.eq.s32.totalorder %v2580_v44, 0  ;;  %v2002_v52 = vmin.u32 %v682_v55, %v2622_v57  ;;  %v764_v54 = vsel %vm752_vm0, %v742_v23, %v745_v58 }
  0xdf   : > { %v291_v46 = vsel %vm289_vm9, %v290_v48, %v2156_v27  ;;  %v500_v28 = vsel %vm498_vm10, %v290_v48, %v2156_v27  ;;  %vm597_vm7 = vcmp.lt.s32.totalorder %v2580_v44, 2  ;;  %v736_v45 = vshrl.u32 %v2266_v43, %v2582_v35 }
  0xe0   : > { %v288_v34 = vsel %vm286_vm11, %v2154_v24, %v287_v39  ;;  %v497_v36 = vsel %vm495_vm12, %v2154_v24, %v287_v39  ;;  %v766_v59 = vsel %vm754_vm3, %v748_v8, %v765_v17  ;;  %vm386_vm8 = vweird.f32 %v2370_v14 }
  0xe1   : > { %v292_v38 = vsel %vm285_vm13, %v288_v34, %v291_v46  ;;  %v501_v56 = vsel %vm494_vm14, %v497_v36, %v500_v28  ;;  %v684_v29 = vclz %v2002_v52  ;;  %v763_v26 = vsel %vm753_vm2, %v760_v1, %v762_v33 }
  0xe2   : > { %v293_v61 = vsel %vm282_vm15, nan, %v292_v38  ;;  %v502_v32 = vsel %vm282_vm15, nan, %v501_v56  ;;  %vm2677_vm9 = vcmp.le.f32.partialorder %v616_v41, 0.7853982  ;;  %v702_v18 = vsub.s32 4, %v2606_v3 }
  0xe3   : > { %398 = vst [vmem:[%s2671_s16] sm:$0xff] %v293_v61  ;;  %606 = vst [vmem:[%s2671_s16 + $0x40] sm:$0xff] %v502_v32  ;;  %v756_v13 = vsel %vm752_vm0, %v736_v45, %v739_v6  ;;  %v758_v62 = vsel %vm754_vm3, %v742_v23, %v757_v31  ;;  %v767_v63 = vsel %vm753_vm2, %v764_v54, %v766_v59  ;;  %v2003_v4 = vadd.s32 4294967294, %v684_v29 }
  0xe4   : > { %v2689_v5 = vmul.u32.u64.low %v2620_v22, %v767_v63  ;;  %v2690_v2 = vmul.u32.u64.high %v2620_v22, %v767_v63, %v2689_v5  ;;  %v1046_v41 = vshrl.u32 %v1045_v37, 23  ;;  %v2158_v8 = vpop.eup %2157  ;;  %vm389_vm10 = vcmp.lt.s32.totalorder %v2603_v0, 2 }
  0xe5   : > { %vm390_vm11 = vcmp.eq.s32.totalorder %v2603_v0, 0  ;;  %v2695_v9 = vmul.u32.u64.low %v2620_v22, %v763_v26  ;;  %v2696_v6 = vmul.u32.u64.high %v2620_v22, %v763_v26, %v2695_v9  ;;  %v2160_v19 = vpop.eup %2159  ;;  %vm393_vm12 = vcmp.eq.s32.totalorder %v2603_v0, 2 }
  0xe6   : > { %v394_v20 = vxor.u32 2147483648, %v2158_v8  ;;  %v672_v23 = vadd.s32 %v2551_v16, %v2547_v7  ;;  %vm2004_vm13 = vcmp.lt.s32.totalorder %v2003_v4, 0  ;;  %v391_v58 = vxor.u32 2147483648, %v2160_v19 }
  0xe7   : > { %v687_v30 = vsel %vm2004_vm13, 0, %v2003_v4  ;;  %v703_v24 = vsel %vm618_vm4, %v702_v18, %v2606_v3  ;;  %v759_v25 = vsel %vm753_vm2, %v756_v13, %v758_v62  ;;  %v2017_v39 = vadd.s32 4294967169, %v1046_v41 }
  0xe8   : > { %v395_v37 = vsel %vm393_vm12, %v394_v20, %v2160_v19  ;;  %v603_v27 = vsel %vm601_vm5, %v394_v20, %v2160_v19  ;;  %v688_v48 = vsub.s32 32, %v687_v30  ;;  %v392_v7 = vsel %vm390_vm11, %v2158_v8, %v391_v58 }
  0xe9   : > { %v600_v16 = vsel %vm598_vm6, %v2158_v8, %v391_v58  ;;  %v689_v55 = vshll.u32 %v2622_v57, %v687_v30  ;;  %v692_v3 = vsub.s32 4294967266, %v687_v30  ;;  %v396_v15 = vsel %vm389_vm10, %v392_v7, %v395_v37 }
  0xea   : > { %v604_v31 = vsel %vm597_vm7, %v600_v16, %v603_v27  ;;  %v690_v1 = vshrl.u32 %v672_v23, %v688_v48  ;;  %vm777_vm14 = vc.u32 %v2690_v2, %v2695_v9  ;;  %v397_v46 = vsel %vm386_vm8, nan, %v396_v15 }
  0xeb   : > { %v605_v28 = vsel %vm386_vm8, nan, %v604_v31  ;;  %v693_v33 = vadd.s32 127, %v692_v3  ;;  %v778_v57 = vadd.s32 1, %v2696_v6  ;;  %399 = vst [vmem:[%s2671_s16 + $0x8] sm:$0xff] %v397_v46  ;;  %v705_v0 = vsel %vm2677_vm9, 0, %v703_v24 }
  0xec   : > { %607 = vst [vmem:[%s2671_s16 + $0x48] sm:$0xff] %v605_v28  ;;  %v775_v44 = vmul.u32 %v2620_v22, %v759_v25  ;;  %v1042_v17 = vand.u32 2147483647, %v2470_v42  ;;  %v1052_v34 = vadd.s32 1, %v2017_v39  ;;  %v691_v36 = vor.u32 %v690_v1, %v689_v55 }
  0xed   : > { %v694_v52 = vshll.u32 %v693_v33, 23  ;;  %v779_v54 = vsel %vm777_vm14, %v778_v57, %v2696_v6  ;;  %v709_v56 = vadd.s32 3, %v705_v0  ;;  %v1149_v29 = vand.u32 2139095040, %v2473_v40 }
  0xee   : > { %v780_v38 = vadd.s32 %v779_v54, %v775_v44  ;;  %vm1053_vm15 = vcmp.gt.s32.totalorder %v1052_v34, 0  ;;  %v1049_v61 = vand.u32 8388607, %v1042_v17  ;;  %v698_v26 = vcvt.s32.f32 %v691_v36 }
  0xef   : > { %v695_v14 = vor.u32 4788187, %v694_v52  ;;  %v1054_v45 = vsel %vm1053_vm15, %v1052_v34, 0  ;;  %v1146_v18 = vand.u32 2147483647, %v2473_v40  ;;  %v2738_v4 = vand.u32 3, %v709_v56 }
  0xf0   : > { %v781_v59 = vadd.s32 536870912, %v780_v38  ;;  %v1056_v32 = vand.u32 31, %v1054_v45  ;;  %v2741_v41 = vand.u32 3, %v705_v0  ;;  %v1050_v8 = vor.u32 8388608, %v1049_v61 }
  0xf1   : > { %v696_v22 = vand.u32 2147483647, %v695_v14  ;;  %v1150_v6 = vshrl.u32 %v1149_v29, 23  ;;  %v2747_v58 = vand.u32 8388607, %v1146_v18  ;;  %v2751_v24 = vshrl.u32 %v1054_v45, 5 }
  0xf2   : > { %v2736_v13 = vshrl.u32 %v781_v59, 30  ;;  %v1057_v62 = vsub.s32 32, %v1056_v32  ;;  %vm722_vm1 = vcmp.lt.s32.totalorder %v2457_v12, 0  ;;  %v1059_v48 = vshll.u32 %v2266_v43, %v1056_v32 }
  0xf3   : > { %v699_v63 = vmul.f32 %v698_v26, %v696_v22  ;;  %v1062_v39 = vshll.u32 %v2267_v47, %v1056_v32  ;;  %v1065_v3 = vshll.u32 %v2268_v49, %v1056_v32  ;;  %v1068_v15 = vshll.u32 %v2269_v51, %v1056_v32 }
  0xf4   : > { %v783_v5 = vshll.u32 %v2736_v13, 30  ;;  %v1060_v20 = vshrl.u32 %v2267_v47, %v1057_v62  ;;  %v1063_v23 = vshrl.u32 %v2268_v49, %v1057_v62  ;;  %v1066_v25 = vshrl.u32 %v2269_v51, %v1057_v62 }
  0xf5   : > { %v700_v19 = vxor.u32 2147483648, %v699_v63  ;;  %v1069_v37 = vshrl.u32 %v2270_v53, %v1057_v62  ;;  %v1072_v7 = vshrl.u32 %v2271_v60, %v1057_v62  ;;  %v1071_v46 = vshll.u32 %v2270_v53, %v1056_v32 }
  0xf6   : > { %v2749_v30 = vsub.s32 %v780_v38, %v783_v5  ;;  %v1061_v31 = vor.u32 %v1060_v20, %v1059_v48  ;;  %v1064_v1 = vor.u32 %v1063_v23, %v1062_v39  ;;  %v1067_v33 = vor.u32 %v1066_v25, %v1065_v3 }
  0xf7   : > { %v701_v27 = vsel %vm618_vm4, %v700_v19, %v699_v63  ;;  %v1070_v57 = vor.u32 %v1069_v37, %v1068_v15  ;;  %v776_v35 = vadd.s32 %v2695_v9, %v2690_v2  ;;  %v1073_v0 = vor.u32 %v1072_v7, %v1071_v46 }
  0xf8   : > { %v704_v16 = vsel %vm2677_vm9, %v2380_v21, %v701_v27  ;;  %v786_v55 = vsub.s32 0, %v2749_v30  ;;  %v2771_v44 = vshll.u32 %v1050_v8, 8  ;;  %v2021_v34 = vadd.s32 4294967169, %v1150_v6 }
  0xf9   : > { %2161 = vcosq.f32 %v704_v16  ;;  %v806_v52 = vsub.s32 4, %v2736_v13  ;;  %vm1074_vm0 = vcmp.lt.s32.totalorder %v2751_v24, 1  ;;  %v1154_v54 = vor.u32 8388608, %v2747_v58 }
  0xfa   : > { %2163 = vsinq.f32 %v704_v16  ;;  %v2006_v28 = vmin.u32 %v786_v55, %v2749_v30  ;;  %vm715_vm2 = vcmp.eq.s32.totalorder %v2738_v4, 2  ;;  %vm924_vm3 = vcmp.eq.s32.totalorder %v2741_v41, 2 }
  0xfb   : > { %v1058_v38 = vshrl.u32 %v2266_v43, %v1057_v62  ;;  %vm1075_vm4 = vcmp.lt.s32.totalorder %v2751_v24, 2  ;;  %vm1077_vm5 = vcmp.lt.s32.totalorder %v2751_v24, 4  ;;  %v1082_v2 = vsel %vm1074_vm0, %v1061_v31, %v1064_v1 }
  0xfc   : > { %v788_v36 = vclz %v2006_v28  ;;  %vm712_vm6 = vcmp.eq.s32.totalorder %v2738_v4, 0  ;;  %vm2786_vm7 = vcmp.le.f32.partialorder %v720_v50, 0.7853982  ;;  %vm921_vm8 = vcmp.eq.s32.totalorder %v2741_v41, 0 }
  0xfd   : > { %vm1076_vm9 = vcmp.lt.s32.totalorder %v2751_v24, 3  ;;  %v1083_v56 = vsel %vm1077_vm5, %v1070_v57, 920167782  ;;  %v1086_v45 = vsel %vm1074_vm0, %v1064_v1, %v1067_v33  ;;  %vm711_vm10 = vcmp.lt.s32.totalorder %v2738_v4, 2 }
  0xfe   : > { %v2007_v14 = vadd.s32 4294967294, %v788_v36  ;;  %vm920_vm11 = vcmp.lt.s32.totalorder %v2741_v41, 2  ;;  %v1079_v59 = vsel %vm1077_vm5, %v1067_v33, 2102212464  ;;  %v1084_v50 = vsel %vm1076_vm9, %v1067_v33, %v1083_v56 }
  0xff   : > { %v1087_v61 = vsel %vm1077_vm5, %v1073_v0, 1326507024  ;;  %v1156_v32 = vadd.s32 1, %v2021_v34  ;;  %vm708_vm12 = vweird.f32 %v2380_v21  ;;  %v807_v29 = vsel %vm722_vm1, %v806_v52, %v2736_v13 }
 0x100   : > { %vm2008_vm13 = vcmp.lt.s32.totalorder %v2007_v14, 0  ;;  %v1085_v22 = vsel %vm1075_vm4, %v1082_v2, %v1084_v50  ;;  %v1088_v26 = vsel %vm1076_vm9, %v1070_v57, %v1087_v61  ;;  %v1078_v13 = vsel %vm1074_vm0, %v1058_v38, %v1061_v31 }
 0x101   : > { %v791_v62 = vsel %vm2008_vm13, 0, %v2007_v14  ;;  %v1089_v63 = vsel %vm1075_vm4, %v1086_v45, %v1088_v26  ;;  %v2809_v5 = vmul.u32.u64.low %v2771_v44, %v1085_v22  ;;  %v2810_v8 = vmul.u32.u64.high %v2771_v44, %v1085_v22, %v2809_v5 }
 0x102   : > { %v792_v6 = vsub.s32 32, %v791_v62  ;;  %v796_v19 = vsub.s32 4294967266, %v791_v62  ;;  %v1080_v20 = vsel %vm1076_vm9, %v1064_v1, %v1079_v59  ;;  %v793_v25 = vshll.u32 %v2749_v30, %v791_v62 }
 0x103   : > { %v2162_v23 = vpop.eup %2161  ;;  %v2819_v37 = vmul.u32.u64.low %v2771_v44, %v1089_v63  ;;  %v2820_v27 = vmul.u32.u64.high %v2771_v44, %v1089_v63, %v2819_v37  ;;  %vm1157_vm14 = vcmp.gt.s32.totalorder %v1156_v32, 0  ;;  %v1081_v15 = vsel %vm1075_vm4, %v1078_v13, %v1080_v20 }
 0x104   : > { %v2164_v48 = vpop.eup %2163  ;;  %v716_v39 = vxor.u32 2147483648, %v2162_v23  ;;  %v794_v7 = vshrl.u32 %v776_v35, %v792_v6  ;;  %v797_v16 = vadd.s32 127, %v796_v19  ;;  %v1158_v55 = vsel %vm1157_vm14, %v1156_v32, 0 }
 0x105   : > { %v713_v3 = vxor.u32 2147483648, %v2164_v48  ;;  %v1100_v31 = vadd.s32 1, %v2810_v8  ;;  %v1160_v1 = vand.u32 31, %v1158_v55  ;;  %v809_v24 = vsel %vm2786_vm7, 0, %v807_v29 }
 0x106   : > { %v717_v30 = vsel %vm715_vm2, %v716_v39, %v2164_v48  ;;  %v795_v46 = vor.u32 %v794_v7, %v793_v25  ;;  %v798_v28 = vshll.u32 %v797_v16, 23  ;;  %v926_v33 = vsel %vm924_vm3, %v716_v39, %v2164_v48 }
 0x107   : > { %v714_v57 = vsel %vm712_vm6, %v2162_v23, %v713_v3  ;;  %v923_v35 = vsel %vm921_vm8, %v2162_v23, %v713_v3  ;;  %vm1099_vm15 = vc.u32 %v2820_v27, %v2809_v5  ;;  %v1097_v52 = vmul.u32 %v2771_v44, %v1081_v15 }
 0x108   : > { %v718_v0 = vsel %vm711_vm10, %v714_v57, %v717_v30  ;;  %v799_v34 = vor.u32 4788187, %v798_v28  ;;  %v927_v36 = vsel %vm920_vm11, %v923_v35, %v926_v33  ;;  %v1101_v14 = vsel %vm1099_vm15, %v1100_v31, %v2810_v8  ;;  %v1464_v33 = vpop.permute.xlu1 %1463 }
 0x109   : > { %v719_v38 = vsel %vm708_vm12, nan, %v718_v0  ;;  %v928_v2 = vsel %vm708_vm12, nan, %v927_v36  ;;  %v1161_v56 = vsub.s32 32, %v1160_v1  ;;  %v802_v59 = vcvt.s32.f32 %v795_v46 }
 0x10a   : > { %v800_v45 = vand.u32 2147483647, %v799_v34  ;;  %v813_v50 = vadd.s32 3, %v809_v24  ;;  %824 = vst [vmem:[%s2671_s16 + $0x10] sm:$0xff] %v719_v38  ;;  %1032 = vst [vmem:[%s2671_s16 + $0x50] sm:$0xff] %v928_v2  ;;  %v1102_v4 = vadd.s32 %v1101_v14, %v1097_v52  ;;  %v1159_v61 = vshrl.u32 %v1158_v55, 5 }
 0x10b   : > { %v1163_v41 = vshll.u32 %v2266_v43, %v1160_v1  ;;  %v1164_v44 = vshrl.u32 %v2267_v47, %v1161_v56  ;;  %v1167_v32 = vshrl.u32 %v2268_v49, %v1161_v56  ;;  %v1166_v21 = vshll.u32 %v2267_v47, %v1160_v1 }
 0x10c   : > { %v803_v29 = vmul.f32 %v802_v59, %v800_v45  ;;  %v1103_v22 = vadd.s32 536870912, %v1102_v4  ;;  %v1170_v26 = vshrl.u32 %v2269_v51, %v1161_v56  ;;  %v1169_v63 = vshll.u32 %v2268_v49, %v1160_v1 }
 0x10d   : > { %v1165_v62 = vor.u32 %v1164_v44, %v1163_v41  ;;  %v1172_v8 = vshll.u32 %v2269_v51, %v1160_v1  ;;  %v1173_v6 = vshrl.u32 %v2270_v53, %v1161_v56  ;;  %v1168_v20 = vor.u32 %v1167_v32, %v1166_v21 }
 0x10e   : > { %v804_v19 = vxor.u32 2147483648, %v803_v29  ;;  %v1104_v13 = vshrl.u32 %v1103_v22, 30  ;;  %v1176_v23 = vshrl.u32 %v2271_v60, %v1161_v56  ;;  %v1171_v25 = vor.u32 %v1170_v26, %v1169_v63 }
 0x10f   : > { %v1174_v37 = vor.u32 %v1173_v6, %v1172_v8  ;;  %v1175_v48 = vshll.u32 %v2270_v53, %v1160_v1  ;;  %v2861_v7 = vand.u32 3, %v813_v50  ;;  %v2863_v16 = vand.u32 3, %v809_v24 }
 0x110   : > { %v805_v39 = vsel %vm722_vm1, %v804_v19, %v803_v29  ;;  %vm1044_vm0 = vcmp.lt.s32.totalorder %v2470_v42, 0  ;;  %v1105_v55 = vshll.u32 %v1104_v13, 30  ;;  %vm1178_vm2 = vcmp.lt.s32.totalorder %v1159_v61, 1 }
 0x111   : > { %v808_v3 = vsel %vm2786_vm7, %v2457_v12, %v805_v39  ;;  %v1177_v15 = vor.u32 %v1176_v23, %v1175_v48  ;;  %v2871_v31 = vshll.u32 %v1154_v54, 8  ;;  %vm1181_vm1 = vcmp.lt.s32.totalorder %v1159_v61, 4 }
 0x112   : > { %2165 = vcosq.f32 %v808_v3  ;;  %v2873_v1 = vsub.s32 %v1102_v4, %v1105_v55  ;;  %v1186_v30 = vsel %vm1178_vm2, %v1165_v62, %v1168_v20  ;;  %vm1180_vm3 = vcmp.lt.s32.totalorder %v1159_v61, 3 }
 0x113   : > { %2167 = vsinq.f32 %v808_v3  ;;  %v1183_v46 = vsel %vm1181_vm1, %v1171_v25, 2102212464  ;;  %v1187_v28 = vsel %vm1181_vm1, %v1174_v37, 920167782  ;;  %v1162_v57 = vshrl.u32 %v2266_v43, %v1161_v56 }
 0x114   : > { %v1108_v9 = vsub.s32 0, %v2873_v1  ;;  %vm1179_vm4 = vcmp.lt.s32.totalorder %v1159_v61, 2  ;;  %v1188_v24 = vsel %vm1180_vm3, %v1171_v25, %v1187_v28  ;;  %v1128_v58 = vsub.s32 4, %v1104_v13 }
 0x115   : > { %v1189_v54 = vsel %vm1179_vm4, %v1186_v30, %v1188_v24  ;;  %v1190_v35 = vsel %vm1178_vm2, %v1168_v20, %v1171_v25  ;;  %v1191_v0 = vsel %vm1181_vm1, %v1177_v15, 1326507024  ;;  %v1182_v36 = vsel %vm1178_vm2, %v1162_v57, %v1165_v62 }
 0x116   : > { %v2018_v34 = vmin.u32 %v1108_v9, %v2873_v1  ;;  %v1184_v52 = vsel %vm1180_vm3, %v1168_v20, %v1183_v46  ;;  %v1192_v38 = vsel %vm1180_vm3, %v1174_v37, %v1191_v0  ;;  %v2889_v56 = vmul.f32 %v1464_v33, %v2362_v10 }
 0x117   : > { %v1193_v2 = vsel %vm1179_vm4, %v1190_v35, %v1192_v38  ;;  %v2884_v14 = vmul.u32.u64.low %v2871_v31, %v1189_v54  ;;  %v2885_v45 = vmul.u32.u64.high %v2871_v31, %v1189_v54, %v2884_v14  ;;  %vm1023_vm5 = vcmp.lt.s32.totalorder %v2863_v16, 2 }
 0x118   : > { %vm1024_vm6 = vcmp.eq.s32.totalorder %v2863_v16, 0  ;;  %vm2895_vm7 = vcmp.le.f32.partialorder %v1042_v17, 0.7853982  ;;  %v1110_v50 = vclz %v2018_v34  ;;  %vm812_vm8 = vweird.f32 %v2457_v12 }
 0x119   : > { %v1129_v4 = vsel %vm1044_vm0, %v1128_v58, %v1104_v13  ;;  %v1185_v41 = vsel %vm1179_vm4, %v1182_v36, %v1184_v52  ;;  %v2904_v10 = vmul.u32.u64.low %v2871_v31, %v1193_v2  ;;  %v2905_v44 = vmul.u32.u64.high %v2871_v31, %v1193_v2, %v2904_v10 }
 0x11a   : > { %vm815_vm9 = vcmp.lt.s32.totalorder %v2861_v7, 2  ;;  %vm816_vm10 = vcmp.eq.s32.totalorder %v2861_v7, 0  ;;  %vm1027_vm11 = vcmp.eq.s32.totalorder %v2863_v16, 2  ;;  %v2019_v17 = vadd.s32 4294967294, %v1110_v50 }
 0x11b   : > { %vm819_vm12 = vcmp.eq.s32.totalorder %v2861_v7, 2  ;;  %v1204_v32 = vadd.s32 1, %v2885_v45  ;;  %v2913_v29 = vmul.f32 %v1464_v33, %v2364_v11  ;;  %v1471_v61 = vand.u32 2139095040, %v2889_v56 }
 0x11c   : > { %v2166_v22 = vpop.eup %2165  ;;  %v1098_v21 = vadd.s32 %v2809_v5, %v2820_v27  ;;  %vm2020_vm13 = vcmp.lt.s32.totalorder %v2019_v17, 0  ;;  %v1131_v26 = vsel %vm2895_vm7, 0, %v1129_v4  ;;  %v1201_v62 = vmul.u32 %v2871_v31, %v1185_v41 }
 0x11d   : > { %v2168_v63 = vpop.eup %2167  ;;  %v820_v8 = vxor.u32 2147483648, %v2166_v22  ;;  %v1113_v6 = vsel %vm2020_vm13, 0, %v2019_v17  ;;  %vm1203_vm14 = vc.u32 %v2905_v44, %v2884_v14  ;;  %v1468_v11 = vand.u32 2147483647, %v2889_v56 }
 0x11e   : > { %v817_v19 = vxor.u32 2147483648, %v2168_v63  ;;  %v1114_v13 = vsub.s32 32, %v1113_v6  ;;  %v1115_v20 = vshll.u32 %v2873_v1, %v1113_v6  ;;  %v1118_v23 = vsub.s32 4294967266, %v1113_v6 }
 0x11f   : > { %v821_v5 = vsel %vm819_vm12, %v820_v8, %v2168_v63  ;;  %v1029_v27 = vsel %vm1027_vm11, %v820_v8, %v2168_v63  ;;  %v1205_v25 = vsel %vm1203_vm14, %v1204_v32, %v2885_v45  ;;  %v1472_v37 = vshrl.u32 %v1471_v61, 23 }
 0x120   : > { %v818_v48 = vsel %vm816_vm10, %v2166_v22, %v817_v19  ;;  %v1026_v39 = vsel %vm1024_vm6, %v2166_v22, %v817_v19  ;;  %v1116_v55 = vshrl.u32 %v1098_v21, %v1114_v13  ;;  %v1119_v3 = vadd.s32 127, %v1118_v23 }
 0x121   : > { %v822_v15 = vsel %vm815_vm9, %v818_v48, %v821_v5  ;;  %v1030_v31 = vsel %vm1023_vm5, %v1026_v39, %v1029_v27  ;;  %v1206_v1 = vadd.s32 %v1205_v25, %v1201_v62  ;;  %v2033_v30 = vadd.s32 4294967169, %v1472_v37 }
 0x122   : > { %v823_v46 = vsel %vm812_vm8, nan, %v822_v15  ;;  %v1031_v28 = vsel %vm812_vm8, nan, %v1030_v31  ;;  %v1117_v33 = vor.u32 %v1116_v55, %v1115_v20  ;;  %v1120_v9 = vshll.u32 %v1119_v3, 23 }
 0x123   : > { %825 = vst [vmem:[%s2671_s16 + $0x18] sm:$0xff] %v823_v46  ;;  %1033 = vst [vmem:[%s2671_s16 + $0x58] sm:$0xff] %v1031_v28  ;;  %v1207_v57 = vadd.s32 536870912, %v1206_v1  ;;  %v1475_v7 = vand.u32 8388607, %v1468_v11  ;;  %v1478_v24 = vadd.s32 1, %v2033_v30  ;;  %v1202_v22 = vadd.s32 %v2884_v14, %v2905_v44 }
 0x124   : > { %v1575_v16 = vand.u32 2139095040, %v2913_v29  ;;  %v1121_v58 = vor.u32 4788187, %v1120_v9  ;;  %v1572_v35 = vand.u32 2147483647, %v2913_v29  ;;  %v1124_v12 = vcvt.s32.f32 %v1117_v33 }
 0x125   : > { %v2947_v54 = vshrl.u32 %v1207_v57, 30  ;;  %vm1479_vm15 = vcmp.gt.s32.totalorder %v1478_v24, 0  ;;  %v1135_v34 = vadd.s32 3, %v1131_v26  ;;  %v1476_v38 = vor.u32 8388608, %v1475_v7 }
 0x126   : > { %v1122_v0 = vand.u32 2147483647, %v1121_v58  ;;  %v1480_v36 = vsel %vm1479_vm15, %v1478_v24, 0  ;;  %v1576_v45 = vshrl.u32 %v1575_v16, 23  ;;  %v2955_v10 = vand.u32 8388607, %v1572_v35 }
 0x127   : > { %v1209_v52 = vshll.u32 %v2947_v54, 30  ;;  %v1482_v2 = vand.u32 31, %v1480_v36  ;;  %v2957_v32 = vand.u32 3, %v1135_v34  ;;  %v2959_v61 = vand.u32 3, %v1131_v26 }
 0x128   : > { %v1125_v50 = vmul.f32 %v1124_v12, %v1122_v0  ;;  %v2964_v62 = vshll.u32 %v1476_v38, 8  ;;  %v2037_v63 = vadd.s32 4294967169, %v1576_v45  ;;  %v1481_v44 = vshrl.u32 %v1480_v36, 5 }
 0x129   : > { %v2951_v4 = vsub.s32 %v1206_v1, %v1209_v52  ;;  %v1483_v41 = vsub.s32 32, %v1482_v2  ;;  %v1580_v20 = vor.u32 8388608, %v2955_v10  ;;  %v1485_v23 = vshll.u32 %v2266_v43, %v1482_v2 }
 0x12a   : > { %v1126_v17 = vxor.u32 2147483648, %v1125_v50  ;;  %v1488_v5 = vshll.u32 %v2267_v47, %v1482_v2  ;;  %v1491_v27 = vshll.u32 %v2268_v49, %v1482_v2  ;;  %v1232_v37 = vsub.s32 4, %v2947_v54 }
 0x12b   : > { %v1212_v21 = vsub.s32 0, %v2951_v4  ;;  %v1486_v6 = vshrl.u32 %v2267_v47, %v1483_v41  ;;  %v1489_v19 = vshrl.u32 %v2268_v49, %v1483_v41  ;;  %v1492_v13 = vshrl.u32 %v2269_v51, %v1483_v41 }
 0x12c   : > { %v1127_v8 = vsel %vm1044_vm0, %v1126_v17, %v1125_v50  ;;  %vm1148_vm0 = vcmp.lt.s32.totalorder %v2473_v40, 0  ;;  %v1582_v59 = vadd.s32 1, %v2037_v63  ;;  %v1494_v3 = vshll.u32 %v2269_v51, %v1482_v2 }
 0x12d   : > { %v1130_v26 = vsel %vm2895_vm7, %v2470_v42, %v1127_v8  ;;  %v2022_v14 = vmin.u32 %v1212_v21, %v2951_v4  ;;  %v1487_v48 = vor.u32 %v1486_v6, %v1485_v23  ;;  %v1490_v39 = vor.u32 %v1489_v19, %v1488_v5 }
 0x12e   : > { %2169 = vcosq.f32 %v1130_v26  ;;  %v1493_v55 = vor.u32 %v1492_v13, %v1491_v27  ;;  %v1495_v31 = vshrl.u32 %v2270_v53, %v1483_v41  ;;  %v1497_v1 = vshll.u32 %v2270_v53, %v1482_v2 }
 0x12f   : > { %2171 = vsinq.f32 %v1130_v26  ;;  %v1214_v25 = vclz %v2022_v14  ;;  %v1498_v30 = vshrl.u32 %v2271_v60, %v1483_v41  ;;  %vm1141_vm2 = vcmp.eq.s32.totalorder %v2957_v32, 2 }
 0x130   : > { %vm1350_vm1 = vcmp.eq.s32.totalorder %v2959_v61, 2  ;;  %v1484_v46 = vshrl.u32 %v2266_v43, %v1483_v41  ;;  %vm1500_vm3 = vcmp.lt.s32.totalorder %v1481_v44, 1  ;;  %vm1501_vm4 = vcmp.lt.s32.totalorder %v1481_v44, 2 }
 0x131   : > { %v2023_v15 = vadd.s32 4294967294, %v1214_v25  ;;  %vm1502_vm5 = vcmp.lt.s32.totalorder %v1481_v44, 3  ;;  %vm1138_vm6 = vcmp.eq.s32.totalorder %v2957_v32, 0  ;;  %vm1347_vm8 = vcmp.eq.s32.totalorder %v2959_v61, 0 }
 0x132   : > { %v1496_v28 = vor.u32 %v1495_v31, %v1494_v3  ;;  %v1499_v33 = vor.u32 %v1498_v30, %v1497_v1  ;;  %vm1503_vm9 = vcmp.lt.s32.totalorder %v1481_v44, 4  ;;  %vm1137_vm10 = vcmp.lt.s32.totalorder %v2957_v32, 2 }
 0x133   : > { %vm2024_vm7 = vcmp.lt.s32.totalorder %v2023_v15, 0  ;;  %vm1346_vm11 = vcmp.lt.s32.totalorder %v2959_v61, 2  ;;  %v1504_v57 = vsel %vm1500_vm3, %v1484_v46, %v1487_v48  ;;  %v1505_v7 = vsel %vm1503_vm9, %v1493_v55, 2102212464 }
 0x134   : > { %v1217_v9 = vsel %vm2024_vm7, 0, %v2023_v15  ;;  %v1508_v24 = vsel %vm1500_vm3, %v1487_v48, %v1490_v39  ;;  %vm1134_vm12 = vweird.f32 %v2470_v42  ;;  %vm2997_vm13 = vcmp.le.f32.partialorder %v1146_v18, 0.7853982 }
 0x135   : > { %v1218_v58 = vsub.s32 32, %v1217_v9  ;;  %v1222_v0 = vsub.s32 4294967266, %v1217_v9  ;;  %v1506_v12 = vsel %vm1502_vm5, %v1490_v39, %v1505_v7  ;;  %v1512_v34 = vsel %vm1500_vm3, %v1490_v39, %v1493_v55 }
 0x136   : > { %v1219_v36 = vshll.u32 %v2951_v4, %v1217_v9  ;;  %v1509_v52 = vsel %vm1503_vm9, %v1496_v28, 920167782  ;;  %v1513_v38 = vsel %vm1503_vm9, %v1499_v33, 1326507024  ;;  %vm1583_vm14 = vcmp.gt.s32.totalorder %v1582_v59, 0 }
 0x137   : > { %v1220_v2 = vshrl.u32 %v1202_v22, %v1218_v58  ;;  %v1223_v45 = vadd.s32 127, %v1222_v0  ;;  %v1510_v50 = vsel %vm1502_vm5, %v1493_v55, %v1509_v52  ;;  %v1514_v18 = vsel %vm1502_vm5, %v1496_v28, %v1513_v38 }
 0x138   : > { %v2170_v41 = vpop.eup %2169  ;;  %v1233_v17 = vsel %vm1148_vm0, %v1232_v37, %v2947_v54  ;;  %v1507_v21 = vsel %vm1501_vm4, %v1504_v57, %v1506_v12  ;;  %v1515_v63 = vsel %vm1501_vm4, %v1512_v34, %v1514_v18  ;;  %v1584_v8 = vsel %vm1583_vm14, %v1582_v59, 0 }
 0x139   : > { %v2172_v4 = vpop.eup %2171  ;;  %v1142_v6 = vxor.u32 2147483648, %v2170_v41  ;;  %v1221_v19 = vor.u32 %v1220_v2, %v1219_v36  ;;  %v1224_v13 = vshll.u32 %v1223_v45, 23  ;;  %v1511_v22 = vsel %vm1501_vm4, %v1508_v24, %v1510_v50 }
 0x13a   : > { %v1139_v26 = vxor.u32 2147483648, %v2172_v4  ;;  %v3013_v14 = vmul.u32.u64.low %v2964_v62, %v1515_v63  ;;  %v3014_v23 = vmul.u32.u64.high %v2964_v62, %v1515_v63, %v3013_v14  ;;  %v1586_v5 = vand.u32 31, %v1584_v8 }
 0x13b   : > { %v1143_v54 = vsel %vm1141_vm2, %v1142_v6, %v2172_v4  ;;  %v1225_v27 = vor.u32 4788187, %v1224_v13  ;;  %v1228_v25 = vcvt.s32.f32 %v1221_v19  ;;  %v1352_v37 = vsel %vm1350_vm1, %v1142_v6, %v2172_v4 }
 0x13c   : > { %v1140_v44 = vsel %vm1138_vm6, %v2170_v41, %v1139_v26  ;;  %v1349_v59 = vsel %vm1347_vm8, %v2170_v41, %v1139_v26  ;;  %v3025_v48 = vmul.u32.u64.low %v2964_v62, %v1511_v22  ;;  %v3026_v39 = vmul.u32.u64.high %v2964_v62, %v1511_v22, %v3025_v48 }
 0x13d   : > { %v1144_v55 = vsel %vm1137_vm10, %v1140_v44, %v1143_v54  ;;  %v1226_v3 = vand.u32 2147483647, %v1225_v27  ;;  %v1353_v15 = vsel %vm1346_vm11, %v1349_v59, %v1352_v37  ;;  %v1587_v31 = vsub.s32 32, %v1586_v5 }
 0x13e   : > { %v1145_v1 = vsel %vm1134_vm12, nan, %v1144_v55  ;;  %v1235_v30 = vsel %vm2997_vm13, 0, %v1233_v17  ;;  %v1354_v46 = vsel %vm1134_vm12, nan, %v1353_v15  ;;  %v1523_v28 = vmul.u32 %v2964_v62, %v1507_v21 }
 0x13f   : > { %v1229_v33 = vmul.f32 %v1228_v25, %v1226_v3  ;;  %1250 = vst [vmem:[%s2671_s16 + $0x20] sm:$0xff] %v1145_v1  ;;  %1458 = vst [vmem:[%s2671_s16 + $0x60] sm:$0xff] %v1354_v46  ;;  %vm1525_vm15 = vc.u32 %v3014_v23, %v3025_v48  ;;  %v1589_v32 = vshll.u32 %v2266_v43, %v1586_v5  ;;  %v1526_v9 = vadd.s32 1, %v3026_v39 }
 0x140   : > { %v1590_v61 = vshrl.u32 %v2267_v47, %v1587_v31  ;;  %v1585_v57 = vshrl.u32 %v1584_v8, 5  ;;  %v1592_v7 = vshll.u32 %v2267_v47, %v1586_v5  ;;  %v1593_v42 = vshrl.u32 %v2268_v49, %v1587_v31 }
 0x141   : > { %v1230_v24 = vxor.u32 2147483648, %v1229_v33  ;;  %v1595_v62 = vshll.u32 %v2268_v49, %v1586_v5  ;;  %v1596_v0 = vshrl.u32 %v2269_v51, %v1587_v31  ;;  %v1527_v12 = vsel %vm1525_vm15, %v1526_v9, %v3026_v39 }
 0x142   : > { %v1591_v58 = vor.u32 %v1590_v61, %v1589_v32  ;;  %v1594_v34 = vor.u32 %v1593_v42, %v1592_v7  ;;  %v1598_v36 = vshll.u32 %v2269_v51, %v1586_v5  ;;  %v1599_v52 = vshrl.u32 %v2270_v53, %v1587_v31 }
 0x143   : > { %v1231_v38 = vsel %vm1148_vm0, %v1230_v24, %v1229_v33  ;;  %v1528_v2 = vadd.s32 %v1527_v12, %v1523_v28  ;;  %v1601_v47 = vshll.u32 %v2270_v53, %v1586_v5  ;;  %v1602_v45 = vshrl.u32 %v2271_v60, %v1587_v31 }
 0x144   : > { %v1234_v49 = vsel %vm2997_vm13, %v2473_v40, %v1231_v38  ;;  %v1597_v50 = vor.u32 %v1596_v0, %v1595_v62  ;;  %v1600_v18 = vor.u32 %v1599_v52, %v1598_v36  ;;  %v1620_v41 = vshll.u32 %v1580_v20, 8 }
 0x145   : > { %2173 = vcosq.f32 %v1234_v49  ;;  %v1529_v51 = vadd.s32 536870912, %v1528_v2  ;;  %v1603_v17 = vor.u32 %v1602_v45, %v1601_v47  ;;  %vm1604_vm2 = vcmp.lt.s32.totalorder %v1585_v57, 1 }
 0x146   : > { %2175 = vsinq.f32 %v1234_v49  ;;  %v1239_v21 = vadd.s32 3, %v1235_v30  ;;  %vm1607_vm0 = vcmp.lt.s32.totalorder %v1585_v57, 4  ;;  %v1612_v53 = vsel %vm1604_vm2, %v1591_v58, %v1594_v34 }
 0x147   : > { %v3064_v63 = vshrl.u32 %v1529_v51, 30  ;;  %vm1605_vm1 = vcmp.lt.s32.totalorder %v1585_v57, 2  ;;  %vm1606_vm3 = vcmp.lt.s32.totalorder %v1585_v57, 3  ;;  %v1613_v60 = vsel %vm1607_vm0, %v1600_v18, 920167782 }
 0x148   : > { %v1609_v16 = vsel %vm1607_vm0, %v1597_v50, 2102212464  ;;  %v1614_v8 = vsel %vm1606_vm3, %v1597_v50, %v1613_v60  ;;  %v1616_v4 = vsel %vm1604_vm2, %v1594_v34, %v1597_v50  ;;  %v1617_v10 = vsel %vm1607_vm0, %v1603_v17, 1326507024 }
 0x149   : > { %v1531_v20 = vshll.u32 %v3064_v63, 30  ;;  %v1588_v6 = vshrl.u32 %v2266_v43, %v1587_v31  ;;  %v1615_v19 = vsel %vm1605_vm1, %v1612_v53, %v1614_v8  ;;  %v1448_v13 = vand.u32 3, %v1235_v30 }
 0x14a   : > { %v1618_v22 = vsel %vm1606_vm3, %v1600_v18, %v1617_v10  ;;  %v3070_v26 = vmul.u32.u64.low %v1620_v41, %v1615_v19  ;;  %v3071_v14 = vmul.u32.u64.high %v1620_v41, %v1615_v19, %v3070_v26  ;;  %v1610_v27 = vsel %vm1606_vm3, %v1594_v34, %v1609_v16 }
 0x14b   : > { %v1532_v5 = vsub.s32 %v1528_v2, %v1531_v20  ;;  %v1608_v54 = vsel %vm1604_vm2, %v1588_v6, %v1591_v58  ;;  %v1619_v25 = vsel %vm1605_vm1, %v1616_v4, %v1618_v22  ;;  %v1240_v37 = vand.u32 3, %v1239_v21 }
 0x14c   : > { %v3076_v44 = vmul.u32.u64.low %v1620_v41, %v1619_v25  ;;  %v3077_v59 = vmul.u32.u64.high %v1620_v41, %v1619_v25, %v3076_v44  ;;  %v1611_v43 = vsel %vm1605_vm1, %v1608_v54, %v1610_v27  ;;  %v1630_v55 = vadd.s32 1, %v3071_v14 }
 0x14d   : > { %v1534_v39 = vsub.s32 0, %v1532_v5  ;;  %vm1449_vm4 = vcmp.lt.s32.totalorder %v1448_v13, 2  ;;  %vm1450_vm5 = vcmp.eq.s32.totalorder %v1448_v13, 0  ;;  %vm1241_vm6 = vcmp.lt.s32.totalorder %v1240_v37, 2 }
 0x14e   : > { %vm1453_vm7 = vcmp.eq.s32.totalorder %v1448_v13, 2  ;;  %vm1629_vm8 = vc.u32 %v3077_v59, %v3070_v26  ;;  %vm1245_vm9 = vcmp.eq.s32.totalorder %v1240_v37, 2  ;;  %v1627_v28 = vmul.u32 %v1620_v41, %v1611_v43 }
 0x14f   : > { %v2174_v3 = vpop.eup %2173  ;;  %v2034_v15 = vmin.u32 %v1534_v39, %v1532_v5  ;;  %vm1242_vm10 = vcmp.eq.s32.totalorder %v1240_v37, 0  ;;  %v1631_v61 = vsel %vm1629_vm8, %v1630_v55, %v3071_v14  ;;  %vm1238_vm11 = vweird.f32 %v2473_v40 }
 0x150   : > { %v2176_v31 = vpop.eup %2175  ;;  %v1246_v1 = vxor.u32 2147483648, %v2174_v3  ;;  %v1632_v42 = vadd.s32 %v1631_v61, %v1627_v28  ;;  %v1524_v36 = vadd.s32 %v3025_v48, %v3014_v23  ;;  %v1554_v8 = vsub.s32 4, %v3064_v63 }
 0x151   : > { %v1243_v30 = vxor.u32 2147483648, %v2176_v31  ;;  %v1536_v46 = vclz %v2034_v15  ;;  %vm1470_vm13 = vcmp.lt.s32.totalorder %v2889_v56, 0  ;;  %vm1469_vm14 = vcmp.le.f32.partialorder %v1468_v11, 0.7853982 }
 0x152   : > { %v1247_v33 = vsel %vm1245_vm9, %v1246_v1, %v2176_v31  ;;  %v1455_v32 = vsel %vm1453_vm7, %v1246_v1, %v2176_v31  ;;  %v1633_v12 = vadd.s32 536870912, %v1632_v42  ;;  %v1555_v20 = vsel %vm1470_vm13, %v1554_v8, %v3064_v63 }
 0x153   : > { %v1244_v9 = vsel %vm1242_vm10, %v2174_v3, %v1243_v30  ;;  %v1452_v57 = vsel %vm1450_vm5, %v2174_v3, %v1243_v30  ;;  %v2035_v7 = vadd.s32 4294967294, %v1536_v46  ;;  %v1628_v13 = vadd.s32 %v3070_v26, %v3077_v59 }
 0x154   : > { %v1248_v24 = vsel %vm1241_vm6, %v1244_v9, %v1247_v33  ;;  %v1456_v58 = vsel %vm1449_vm4, %v1452_v57, %v1455_v32  ;;  %v1634_v2 = vshrl.u32 %v1633_v12, 30  ;;  %vm1574_vm2 = vcmp.lt.s32.totalorder %v2913_v29, 0 }
 0x155   : > { %v1249_v62 = vsel %vm1238_vm11, nan, %v1248_v24  ;;  %v1457_v0 = vsel %vm1238_vm11, nan, %v1456_v58  ;;  %vm2036_vm12 = vcmp.lt.s32.totalorder %v2035_v7, 0  ;;  %vm3103_vm0 = vcmp.le.f32.partialorder %v1572_v35, 0.7853982 }
 0x156   : > { %1251 = vst [vmem:[%s2671_s16 + $0x28] sm:$0xff] %v1249_v62  ;;  %1459 = vst [vmem:[%s2671_s16 + $0x68] sm:$0xff] %v1457_v0  ;;  %v1539_v34 = vsel %vm2036_vm12, 0, %v2035_v7  ;;  %v1635_v49 = vshll.u32 %v1634_v2, 30  ;;  %v1658_v26 = vsub.s32 4, %v1634_v2  ;;  %vm1560_vm8 = vweird.f32 %v2889_v56 }
 0x157   : > { %v1540_v52 = vsub.s32 32, %v1539_v34  ;;  %v1544_v38 = vsub.s32 4294967266, %v1539_v34  ;;  %v1541_v47 = vshll.u32 %v1532_v5, %v1539_v34  ;;  %v1557_v5 = vsel %vm1469_vm14, 0, %v1555_v20 }
 0x158   : > { %v1636_v41 = vsub.s32 %v1632_v42, %v1635_v49  ;;  %v1561_v37 = vadd.s32 3, %v1557_v5  ;;  %v1771_v63 = vand.u32 3, %v1557_v5  ;;  %v1659_v35 = vsel %vm1574_vm2, %v1658_v26, %v1634_v2 }
 0x159   : > { %v1542_v45 = vshrl.u32 %v1524_v36, %v1540_v52  ;;  %v1545_v40 = vadd.s32 127, %v1544_v38  ;;  %v1661_v0 = vsel %vm3103_vm0, 0, %v1659_v35 }
 0x15a   : > { %v1638_v17 = vsub.s32 0, %v1636_v41  ;;  %v1562_v43 = vand.u32 3, %v1561_v37  ;;  %vm1772_vm1 = vcmp.lt.s32.totalorder %v1771_v63, 2  ;;  %vm1773_vm3 = vcmp.eq.s32.totalorder %v1771_v63, 0 }
 0x15b   : > { %v1543_v50 = vor.u32 %v1542_v45, %v1541_v47  ;;  %v1546_v18 = vshll.u32 %v1545_v40, 23  ;;  %vm1776_vm5 = vcmp.eq.s32.totalorder %v1771_v63, 2  ;;  %v1665_v12 = vadd.s32 3, %v1661_v0 }
 0x15c   : > { %v2038_v60 = vmin.u32 %v1638_v17, %v1636_v41  ;;  %vm1567_vm4 = vcmp.eq.s32.totalorder %v1562_v43, 2  ;;  %vm1563_vm6 = vcmp.lt.s32.totalorder %v1562_v43, 2  ;;  %vm1564_vm7 = vcmp.eq.s32.totalorder %v1562_v43, 0 }
 0x15d   : > { %v1547_v51 = vor.u32 4788187, %v1546_v18  ;;  %v1550_v53 = vcvt.s32.f32 %v1543_v50  ;;  %v1874_v34 = vand.u32 3, %v1661_v0 }
 0x15e   : > { %v1640_v4 = vclz %v2038_v60 }
 0x15f   : > { %v1548_v21 = vand.u32 2147483647, %v1547_v51  ;;  %vm1879_vm10 = vcmp.eq.s32.totalorder %v1874_v34, 2  ;;  %vm1876_vm12 = vcmp.eq.s32.totalorder %v1874_v34, 0 }
 0x160   : > { %v2039_v48 = vadd.s32 4294967294, %v1640_v4 }
 0x161   : > { %v1551_v16 = vmul.f32 %v1550_v53, %v1548_v21 }
 0x162   : > { %vm2040_vm15 = vcmp.lt.s32.totalorder %v2039_v48, 0 }
 0x163   : > { %v1552_v23 = vxor.u32 2147483648, %v1551_v16  ;;  %v1643_v19 = vsel %vm2040_vm15, 0, %v2039_v48  ;;  %vm1664_vm15 = vweird.f32 %v2913_v29 }
 0x164   : > { %v1644_v22 = vsub.s32 32, %v1643_v19  ;;  %v1648_v14 = vsub.s32 4294967266, %v1643_v19  ;;  %v1645_v54 = vshll.u32 %v1636_v41, %v1643_v19 }
 0x165   : > { %v1553_v10 = vsel %vm1470_vm13, %v1552_v23, %v1551_v16 }
 0x166   : > { %v1556_v6 = vsel %vm1469_vm14, %v2889_v56, %v1553_v10  ;;  %v1646_v27 = vshrl.u32 %v1628_v13, %v1644_v22  ;;  %v1649_v25 = vadd.s32 127, %v1648_v14  ;;  %v1666_v56 = vand.u32 3, %v1665_v12 }
 0x167   : > { %2177 = vcosq.f32 %v1556_v6  ;;  %vm1875_vm14 = vcmp.lt.s32.totalorder %v1874_v34, 2 }
 0x168   : > { %2179 = vsinq.f32 %v1556_v6  ;;  %v1647_v11 = vor.u32 %v1646_v27, %v1645_v54  ;;  %v1650_v44 = vshll.u32 %v1649_v25, 23  ;;  %vm1671_vm9 = vcmp.eq.s32.totalorder %v1666_v56, 2 }
 0x169   : > { %vm1668_vm11 = vcmp.eq.s32.totalorder %v1666_v56, 0  ;;  %vm1667_vm13 = vcmp.lt.s32.totalorder %v1666_v56, 2 }
 0x16a   : > { %v1651_v39 = vor.u32 4788187, %v1650_v44  ;;  %v1654_v3 = vcvt.s32.f32 %v1647_v11 }
 0x16c   : > { %v1652_v55 = vand.u32 2147483647, %v1651_v39 }
 0x16e   : > { %v1655_v31 = vmul.f32 %v1654_v3, %v1652_v55 }
 0x170   : > { %v1656_v28 = vxor.u32 2147483648, %v1655_v31 }
 0x171   : > { %v2178_v15 = vpop.eup %2177 }
 0x172   : > { %v2180_v59 = vpop.eup %2179  ;;  %v1568_v1 = vxor.u32 2147483648, %v2178_v15  ;;  %v1657_v9 = vsel %vm1574_vm2, %v1656_v28, %v1655_v31 }
 0x173   : > { %v1565_v46 = vxor.u32 2147483648, %v2180_v59  ;;  %v1660_v42 = vsel %vm3103_vm0, %v2913_v29, %v1657_v9 }
 0x174   : > { %v1569_v33 = vsel %vm1567_vm4, %v1568_v1, %v2180_v59  ;;  %v1778_v32 = vsel %vm1776_vm5, %v1568_v1, %v2180_v59  ;;  %2181 = vcosq.f32 %v1660_v42 }
 0x175   : > { %v1566_v61 = vsel %vm1564_vm7, %v2178_v15, %v1565_v46  ;;  %v1775_v57 = vsel %vm1773_vm3, %v2178_v15, %v1565_v46  ;;  %2183 = vsinq.f32 %v1660_v42 }
 0x176   : > { %v1570_v7 = vsel %vm1563_vm6, %v1566_v61, %v1569_v33  ;;  %v1779_v24 = vsel %vm1772_vm1, %v1775_v57, %v1778_v32 }
 0x177   : > { %v1571_v58 = vsel %vm1560_vm8, nan, %v1570_v7  ;;  %v1780_v62 = vsel %vm1560_vm8, nan, %v1779_v24 }
 0x178   : > { %1676 = vst [vmem:[%s2671_s16 + $0x30] sm:$0xff] %v1571_v58  ;;  %1884 = vst [vmem:[%s2671_s16 + $0x70] sm:$0xff] %v1780_v62 }
 0x17e   : > { %v2182_v36 = vpop.eup %2181 }
 0x17f   : > { %v2184_v52 = vpop.eup %2183  ;;  %v1672_v38 = vxor.u32 2147483648, %v2182_v36 }
 0x180   : > { %v1669_v2 = vxor.u32 2147483648, %v2184_v52 }
 0x181   : > { %v1673_v47 = vsel %vm1671_vm9, %v1672_v38, %v2184_v52  ;;  %v1881_v45 = vsel %vm1879_vm10, %v1672_v38, %v2184_v52 }
 0x182   : > { %v1670_v40 = vsel %vm1668_vm11, %v2182_v36, %v1669_v2  ;;  %v1878_v49 = vsel %vm1876_vm12, %v2182_v36, %v1669_v2 }
 0x183   : > { %v1674_v50 = vsel %vm1667_vm13, %v1670_v40, %v1673_v47  ;;  %v1882_v18 = vsel %vm1875_vm14, %v1878_v49, %v1881_v45 }
 0x184   : > { %v1675_v41 = vsel %vm1664_vm15, nan, %v1674_v50  ;;  %v1883_v51 = vsel %vm1664_vm15, nan, %v1882_v18 }
 0x185   : > { %1677 = vst [vmem:[%s2671_s16 + $0x38] sm:$0xff] %v1675_v41  ;;  %1885 = vst [vmem:[%s2671_s16 + $0x78] sm:$0xff] %v1883_v51 }
 0x186   : > { %2198 = shalt.err (!%p2195_p5)
}
 0x187   : > { %s2199_s30 = scalar_lea.hbm %s3125_s12, 2048  ;;  %s2203_s5 = scalar_lea.hbm %s3182_s2, 4096 }
 0x188   : > { %p2200_p6 = scmp.ne.s32.totalorder %s3125_s12, %s2199_s30  ;;  %p2204_p10 = scmp.lt.u32.totalorder %s3125_s12, %s3182_s2 }
 0x189   : > { %p2205_p11 = scmp.lt.u32.totalorder %s2203_s5, %s2199_s30  ;;  %p2207_p13 = scmp.lt.u32.totalorder %s2199_s30, %s3125_s12 }
 0x18a   : > { %p2201_p7 = pnand %p2200_p6, %p2330_p4 }
 0x18b   : > { %p2206_p12 = por %p2205_p11, %p2204_p10 }
 0x18c   : > { %p2202_p9 = pneg %p2201_p7 }
 0x18d   : > { %p2208_p0 = por %p2207_p13, %p2206_p12 }
 0x18f   : > { %p2209_p1 = pnand %p2208_p0, %p2202_p9 }
 0x191   : > { %2212 = shalt.err (!%p2209_p1)
}
 0x192   : > { %s2273_s8 = smov 256   ;;  %s2274_s15 = smov 16  }
 0x193   : > { %2087 = dma.vmem_to_hbm [thread:$0]  (%p2330_p4), %s3127_s20, 2048, %s3125_s12, %s3134_s25, %s2273_s8, %s2273_s8, %s2274_s15  }
 0x194 PF: > { %p2093_p2 = scmp.ge.s32.totalorder %s2263_s14, 2  ;;  %s1917_s16 = sand.u32 1, %s2243_s9  }
 0x195   : > { %s1918_s18 = scalar_lea.sflag [#allocation3], %s1917_s16 }
 0x196   : > { %p2090_p3 = pnand %p2093_p2, %p2337_p8 }
 0x198   : > { %2238 = dma.done.wait (!%p2090_p3), %s1918_s18, 2048  }
 0x199   : > { %2240 = vsyncadd (!%p2090_p3), %s1918_s18, 4294965248  ;;  %s15_s14 = sadd.s32 1, %s2263_s14   ;;  %s3199_s9 = smov %s2247_s10 }
 0x19a   : > { %p12_p5 = scmp.ge.s32.totalorder %s15_s14, 4   ;;  %s3200_s10 = smov %s2251_s11 }
 0x19b   : > { %s3201_s11 = smov %s2343_s22  ;;  %s3202_s12 = smov %s2259_s13 }
 0x19c   : > { %s3203_s13 = smov %s3205_s17  ;;  %14 = sbr.rel (!%p12_p5) target bundleno = 4 (0x4), region = 63 }
 0x1a3   :  { %1923 = vsyncpa [#allocation3], 1 }
 0x1a4   :  { %1925 = vsyncpa [#allocation3 + $0x1], 1 }

</bundles_post_ra>
